<compile_context>
chip_gen: v7x
topology: tpu7x:2x2x1
jax: 0.10.0
libtpu: 0.0.40
codegen_flags: <defaults>
</compile_context>

<pallas_src>
import jax
import jax.numpy as jnp
from jax.experimental import pallas as pl
from jax.experimental.pallas import tpu as pltpu


# ---------------------------------------------------------------------------
# Shared kernel tail: fused shared-MLP + gate expansion + lane-dense apply
# ---------------------------------------------------------------------------
def _mlp_gate_store(x, P, eh, ew, w1, b1, w2, b2, out_ref, H, W):
    f32 = jnp.float32
    hid = jnp.dot(w1, P, preferred_element_type=f32) + b1
    hid = jnp.maximum(hid, 0.0)                 # ReLU (eval-mode BN fused into w1/b1)
    y = jnp.dot(w2, hid, preferred_element_type=f32) + b2
    att_h = jax.nn.sigmoid(y[:, 0:H] + y[:, H:2 * H])                               # (R, H)
    att_w = jax.nn.sigmoid(y[:, 2 * H:2 * H + W] + y[:, 2 * H + W:2 * H + 2 * W])   # (R, W)
    g_h = jnp.dot(att_h, eh, preferred_element_type=f32)                            # (R, L)
    g_w = jnp.dot(att_w, ew, preferred_element_type=f32)                            # (R, L)
    out_ref[...] = (x * g_h * g_w).astype(out_ref.dtype)


# ---------------------------------------------------------------------------
# Kernels
# ---------------------------------------------------------------------------
def _make_ggca_kernel_fold(H, W):
    """Power-of-two H, W: roll-tree max pooling (XLU) + MXU descriptor packing."""
    L = H * W

    def kernel(x_ref, a_avg_ref, shh_ref, shl_ref, sw_ref, eh_ref, ew_ref,
               w1_ref, b1_ref, w2_ref, b2_ref, out_ref):
        f32 = jnp.float32
        x = x_ref[...].astype(f32)                          # (R, L), lane l = h*W + w

        # ---- w_max: stride-W residue-class max fold (direction agnostic). ----
        # After the fold every lane l holds max_h x[:, h*W + (l % W)].
        yw = x
        s = W
        while s < L:
            yw = jnp.maximum(yw, pltpu.roll(yw, s, axis=1))
            s *= 2

        # ---- h_max: contiguous W-chunk max fold. ----
        # Chunk-h max lands at lane h*W + (W-1) (np.roll convention) or at lane
        # h*W (opposite convention).
        yh = x
        s = 1
        while s < W:
            yh = jnp.maximum(yh, pltpu.roll(yh, s, axis=1))
            s *= 2

        # Probe the hardware rotate direction with a tiny iota; select the
        # matching extraction matrix (branchless, correct either way).
        iota = jax.lax.broadcasted_iota(jnp.int32, (8, 128), 1)
        probe = pltpu.roll(iota, 1, axis=1)
        sel = (probe[0:1, 1:2] == 0).astype(f32)            # (1,1): 1.0 -> np.roll conv.

        # ---- packed descriptors P (cols: [0:H)=h_avg, [H:2H)=h_max,
        #                                  [2H:2H+W)=w_avg, [2H+W:)=w_max) ----
        P = jnp.dot(x, a_avg_ref[...], preferred_element_type=f32)          # avg pools (MXU)
        ph_hi = jnp.dot(yh, shh_ref[...], preferred_element_type=f32)       # h_max @ lane h*W+W-1
        ph_lo = jnp.dot(yh, shl_ref[...], preferred_element_type=f32)       # h_max @ lane h*W
        P = P + sel * ph_hi + (1.0 - sel) * ph_lo
        P = P + jnp.dot(yw, sw_ref[...], preferred_element_type=f32)        # w_max

        _mlp_gate_store(x, P, eh_ref[...], ew_ref[...],
                        w1_ref[...], b1_ref[...], w2_ref[...], b2_ref[...],
                        out_ref, H, W)

    return kernel


def _make_ggca_kernel_loop(H, W):
    """Fallback for non-power-of-two H or W: sliced VPU/XLU max pooling."""
    def kernel(x_ref, a_avg_ref, plh_ref, plw_ref, eh_ref, ew_ref,
               w1_ref, b1_ref, w2_ref, b2_ref, out_ref):
        f32 = jnp.float32
        x = x_ref[...].astype(f32)                          # (R, L)
        R = x.shape[0]

        w_max = x[:, 0:W]
        for h in range(1, H):
            w_max = jnp.maximum(w_max, x[:, h * W:(h + 1) * W])             # (R, W)

        col = jax.lax.broadcasted_iota(jnp.int32, (1, H), 1)
        h_max = jnp.zeros((R, H), f32)
        for h in range(H):
            m = jnp.max(x[:, h * W:(h + 1) * W], axis=1, keepdims=True)     # (R, 1)
            h_max = jnp.where(col == h, m, h_max)                           # (R, H)

        P = jnp.dot(x, a_avg_ref[...], preferred_element_type=f32)
        P = P + jnp.dot(h_max, plh_ref[...], preferred_element_type=f32)
        P = P + jnp.dot(w_max, plw_ref[...], preferred_element_type=f32)

        _mlp_gate_store(x, P, eh_ref[...], ew_ref[...],
                        w1_ref[...], b1_ref[...], w2_ref[...], b2_ref[...],
                        out_ref, H, W)

    return kernel


# ---------------------------------------------------------------------------
# Constant matrices (avg pooling, max extraction/placement, gate expansion)
# ---------------------------------------------------------------------------
def _avg_and_expand(H, W, dtype):
    L = H * W
    D = 2 * H + 2 * W
    l_idx = jnp.arange(L)
    h_of_l = l_idx // W
    w_of_l = l_idx % W

    a_avg = jnp.zeros((L, D), dtype)
    a_avg = a_avg.at[:, 0:H].set(
        (h_of_l[:, None] == jnp.arange(H)[None, :]).astype(dtype) / W)
    a_avg = a_avg.at[:, 2 * H:2 * H + W].set(
        (w_of_l[:, None] == jnp.arange(W)[None, :]).astype(dtype) / H)

    e_h = (jnp.arange(H)[:, None] == h_of_l[None, :]).astype(dtype)   # (H, L)
    e_w = (jnp.arange(W)[:, None] == w_of_l[None, :]).astype(dtype)   # (W, L)
    return a_avg, e_h, e_w


def _build_constants_fold(H, W, dtype=jnp.float32):
    L = H * W
    D = 2 * H + 2 * W
    a_avg, e_h, e_w = _avg_and_expand(H, W, dtype)
    hs = jnp.arange(H)
    ws = jnp.arange(W)
    s_h_hi = jnp.zeros((L, D), dtype).at[hs * W + (W - 1), H + hs].set(1.0)
    s_h_lo = jnp.zeros((L, D), dtype).at[hs * W, H + hs].set(1.0)
    s_w = jnp.zeros((L, D), dtype).at[ws, 2 * H + W + ws].set(1.0)
    return a_avg, s_h_hi, s_h_lo, s_w, e_h, e_w


def _build_constants_loop(H, W, dtype=jnp.float32):
    D = 2 * H + 2 * W
    a_avg, e_h, e_w = _avg_and_expand(H, W, dtype)
    plh = jnp.zeros((H, D), dtype).at[jnp.arange(H), H + jnp.arange(H)].set(1.0)
    plw = jnp.zeros((W, D), dtype).at[jnp.arange(W), 2 * H + W + jnp.arange(W)].set(1.0)
    return a_avg, plh, plw, e_h, e_w


def _choose_block_slabs(n_slabs, gc, slab_bytes, target_bytes=2 << 20):
    """Largest divisor of n_slabs giving (8,*)-aligned blocks <= target, grid>=2."""
    def rows_ok(d):
        return (d * gc) % 8 == 0 or d == n_slabs
    divs = [d for d in range(1, n_slabs + 1) if n_slabs % d == 0 and rows_ok(d)]
    fit = [d for d in divs if d * slab_bytes <= target_bytes]
    fit_multi = [d for d in fit if n_slabs // d >= 2]
    if fit_multi:
        return max(fit_multi)
    if fit:
        return max(fit)
    return min(divs)


# ---------------------------------------------------------------------------
# Wrapper
# ---------------------------------------------------------------------------
def ggca_forward(x, params, num_groups):
    B, C, H, W = x.shape
    assert C % num_groups == 0
    gc = C // num_groups
    L = H * W
    D = 2 * H + 2 * W
    n_slabs = B * num_groups
    w1f, b1f, w2, b2 = params

    # Lane-dense view: rows = (batch, group, group-channel), lanes = H*W.
    x2 = x.reshape(B * C, L)

    nb = _choose_block_slabs(n_slabs, gc, gc * L * x.dtype.itemsize)
    rows_blk = nb * gc
    grid = (n_slabs // nb,)

    # Block-diagonal per-slab MLP weights: one matmul handles nb slabs at once.
    eye_nb = jnp.eye(nb, dtype=w1f.dtype)
    w1b = jnp.kron(eye_nb, w1f)           # (nb*mid, nb*gc)
    b1b = jnp.tile(b1f, (nb, 1))          # (nb*mid, 1)
    w2b = jnp.kron(eye_nb, w2)            # (nb*gc, nb*mid)
    b2b = jnp.tile(b2, (nb, 1))           # (nb*gc, 1)

    is_pow2 = lambda n: n > 0 and (n & (n - 1)) == 0
    use_fold = is_pow2(H) and is_pow2(W)
    if use_fold:
        consts = _build_constants_fold(H, W, jnp.float32)
        kernel = _make_ggca_kernel_fold(H, W)
    else:
        consts = _build_constants_loop(H, W, jnp.float32)
        kernel = _make_ggca_kernel_loop(H, W)

    def const_spec(arr):
        return pl.BlockSpec(arr.shape, lambda i: (0, 0))

    cost = pl.CostEstimate(
        flops=int(x2.size) * (6 * D + 2 * (H + W) + 4),
        transcendentals=int(B * C * (H + W)),
        bytes_accessed=int(2 * x2.size * x2.dtype.itemsize),
    )

    out2 = pl.pallas_call(
        kernel,
        out_shape=jax.ShapeDtypeStruct(x2.shape, x.dtype),
        grid=grid,
        in_specs=[pl.BlockSpec((rows_blk, L), lambda i: (i, 0))]
                + [const_spec(c) for c in consts]
                + [const_spec(w1b), const_spec(b1b), const_spec(w2b), const_spec(b2b)],
        out_specs=pl.BlockSpec((rows_blk, L), lambda i: (i, 0)),
        compiler_params=pltpu.CompilerParams(
            dimension_semantics=("parallel",),
            vmem_limit_bytes=32 * 1024 * 1024,
        ),
        cost_estimate=cost,
    )(x2, *consts, w1b, b1b, w2b, b2b)

    return out2.reshape(B, C, H, W)


# ---------------------------------------------------------------------------
# Parameters (BN fused into conv1, inference mode) and pure-JAX reference
# ---------------------------------------------------------------------------
def make_params(key, gc, mid):
    """shared_conv = Conv1x1 -> BN(eval) -> ReLU -> Conv1x1, BN fused into conv1."""
    # TODO(synk): training-mode BatchNorm (batch statistics) is not implemented;
    # inference-mode running stats are fused into conv1 here.
    k1, k2, k3, k4, k5, k6 = jax.random.split(key, 6)
    w1 = 0.1 * jax.random.normal(k1, (mid, gc), jnp.float32)
    b1 = 0.1 * jax.random.normal(k2, (mid,), jnp.float32)
    w2 = 0.1 * jax.random.normal(k3, (gc, mid), jnp.float32)
    b2 = 0.1 * jax.random.normal(k4, (gc,), jnp.float32)
    gamma = 1.0 + 0.1 * jax.random.normal(k5, (mid,), jnp.float32)
    beta = 0.1 * jax.random.normal(k6, (mid,), jnp.float32)
    run_mean = jnp.zeros((mid,), jnp.float32)
    run_var = jnp.ones((mid,), jnp.float32)
    eps = 1e-5

    k = gamma / jnp.sqrt(run_var + eps)
    w1f = w1 * k[:, None]
    b1f = (k * (b1 - run_mean) + beta)[:, None]                # (mid, 1)
    b2c = b2[:, None]                                          # (gc, 1)
    return w1f, b1f, w2, b2c


def ggca_ref(x, params, num_groups):
    """Plain-JAX reference of the same forward pass."""
    B, C, H, W = x.shape
    gc = C // num_groups
    w1f, b1f, w2, b2 = params
    xg = x.reshape(B * num_groups, gc, H, W)

    def mlp(p):  # (N, gc, L)
        h = jnp.einsum('mc,ncl->nml', w1f, p) + b1f[None]
        h = jnp.maximum(h, 0.0)
        return jnp.einsum('cm,nml->ncl', w2, h) + b2[None]

    att_h = jax.nn.sigmoid(mlp(xg.mean(3)) + mlp(xg.max(3)))   # (N, gc, H)
    att_w = jax.nn.sigmoid(mlp(xg.mean(2)) + mlp(xg.max(2)))   # (N, gc, W)
    out = xg * att_h[:, :, :, None] * att_w[:, :, None, :]
    return out.reshape(B, C, H, W)


if __name__ == "__main__":
    # Shapes consistent with the module: channels divisible by num_groups,
    # group_channels // reduction >= 1  ->  gc=8, reduction=4, mid=2.
    B, C, H, W = 2, 32, 16, 16
    num_groups = 4
    reduction = 4
    gc = C // num_groups
    mid = gc // reduction

    key = jax.random.PRNGKey(0)
    kx, kp = jax.random.split(key)
    x = jax.random.normal(kx, (B, C, H, W), jnp.float32)
    params = make_params(kp, gc, mid)

    out = ggca_forward(x, params, num_groups)
    out = jax.block_until_ready(out)

    ref = ggca_ref(x, params, num_groups)
    assert out.shape == (B, C, H, W)
    assert jnp.allclose(out, ref, atol=1e-5, rtol=1e-5), "mismatch vs JAX reference"

    print("KERNEL_OK")
</pallas_src>

<mosaic_0001>
module attributes {stable_mosaic.version = 11 : i64} {
  func.func @kernel(%arg0: i32, %arg1: memref<32x256xf32, #tpu.memory_space<vmem>>, %arg2: memref<256x64xf32, #tpu.memory_space<vmem>>, %arg3: memref<256x64xf32, #tpu.memory_space<vmem>>, %arg4: memref<256x64xf32, #tpu.memory_space<vmem>>, %arg5: memref<256x64xf32, #tpu.memory_space<vmem>>, %arg6: memref<16x256xf32, #tpu.memory_space<vmem>>, %arg7: memref<16x256xf32, #tpu.memory_space<vmem>>, %arg8: memref<8x32xf32, #tpu.memory_space<vmem>>, %arg9: memref<8x1xf32, #tpu.memory_space<vmem>>, %arg10: memref<32x8xf32, #tpu.memory_space<vmem>>, %arg11: memref<32x1xf32, #tpu.memory_space<vmem>>, %arg12: memref<32x256xf32, #tpu.memory_space<vmem>>) attributes {dimension_semantics = [#tpu.dimension_semantics<parallel>], iteration_bounds = array<i64: 2>, scalar_prefetch = 0 : i64, scratch_operands = 0 : i64, tpu.core_type = #tpu.core_type<tc>, window_params = [{transform_indices = @transform_0, window_bounds = array<i64: 32, 256>}, {pipeline_mode = #tpu.pipeline_mode<synchronous>, transform_indices = @transform_1, window_bounds = array<i64: 256, 64>}, {pipeline_mode = #tpu.pipeline_mode<synchronous>, transform_indices = @transform_2, window_bounds = array<i64: 256, 64>}, {pipeline_mode = #tpu.pipeline_mode<synchronous>, transform_indices = @transform_3, window_bounds = array<i64: 256, 64>}, {pipeline_mode = #tpu.pipeline_mode<synchronous>, transform_indices = @transform_4, window_bounds = array<i64: 256, 64>}, {pipeline_mode = #tpu.pipeline_mode<synchronous>, transform_indices = @transform_5, window_bounds = array<i64: 16, 256>}, {pipeline_mode = #tpu.pipeline_mode<synchronous>, transform_indices = @transform_6, window_bounds = array<i64: 16, 256>}, {pipeline_mode = #tpu.pipeline_mode<synchronous>, transform_indices = @transform_7, window_bounds = array<i64: 8, 32>}, {pipeline_mode = #tpu.pipeline_mode<synchronous>, transform_indices = @transform_8, window_bounds = array<i64: 8, 1>}, {pipeline_mode = #tpu.pipeline_mode<synchronous>, transform_indices = @transform_9, window_bounds = array<i64: 32, 8>}, {pipeline_mode = #tpu.pipeline_mode<synchronous>, transform_indices = @transform_10, window_bounds = array<i64: 32, 1>}, {transform_indices = @transform_11, window_bounds = array<i64: 32, 256>}]} {
    %c0 = arith.constant 0 : index
    %c0_0 = arith.constant 0 : index
    %0 = vector.load %arg1[%c0, %c0_0] : memref<32x256xf32, #tpu.memory_space<vmem>>, vector<32x256xf32>
    %c16_i32 = arith.constant 16 : i32
    %1 = tpu.dynamic_rotate %0 by %c16_i32 dim 1 : vector<32x256xf32>, i32 -> vector<32x256xf32>
    %2 = arith.maximumf %0, %1 : vector<32x256xf32>
    %c32_i32 = arith.constant 32 : i32
    %3 = tpu.dynamic_rotate %2 by %c32_i32 dim 1 : vector<32x256xf32>, i32 -> vector<32x256xf32>
    %4 = arith.maximumf %2, %3 : vector<32x256xf32>
    %c64_i32 = arith.constant 64 : i32
    %5 = tpu.dynamic_rotate %4 by %c64_i32 dim 1 : vector<32x256xf32>, i32 -> vector<32x256xf32>
    %6 = arith.maximumf %4, %5 : vector<32x256xf32>
    %c128_i32 = arith.constant 128 : i32
    %7 = tpu.dynamic_rotate %6 by %c128_i32 dim 1 : vector<32x256xf32>, i32 -> vector<32x256xf32>
    %8 = arith.maximumf %6, %7 : vector<32x256xf32>
    %c1_i32 = arith.constant 1 : i32
    %9 = tpu.dynamic_rotate %0 by %c1_i32 dim 1 : vector<32x256xf32>, i32 -> vector<32x256xf32>
    %10 = arith.maximumf %0, %9 : vector<32x256xf32>
    %c2_i32 = arith.constant 2 : i32
    %11 = tpu.dynamic_rotate %10 by %c2_i32 dim 1 : vector<32x256xf32>, i32 -> vector<32x256xf32>
    %12 = arith.maximumf %10, %11 : vector<32x256xf32>
    %c4_i32 = arith.constant 4 : i32
    %13 = tpu.dynamic_rotate %12 by %c4_i32 dim 1 : vector<32x256xf32>, i32 -> vector<32x256xf32>
    %14 = arith.maximumf %12, %13 : vector<32x256xf32>
    %c8_i32 = arith.constant 8 : i32
    %15 = tpu.dynamic_rotate %14 by %c8_i32 dim 1 : vector<32x256xf32>, i32 -> vector<32x256xf32>
    %16 = arith.maximumf %14, %15 : vector<32x256xf32>
    %17 = tpu.iota {dimensions = array<i32: 1>} : vector<8x128xi32>
    %c1_i32_1 = arith.constant 1 : i32
    %18 = tpu.dynamic_rotate %17 by %c1_i32_1 dim 1 : vector<8x128xi32>, i32 -> vector<8x128xi32>
    %19 = vector.extract_strided_slice %18 {offsets = [0, 1], sizes = [1, 1], strides = [1, 1]} : vector<8x128xi32> to vector<1x1xi32>
    %c0_i32 = arith.constant 0 : i32
    %20 = vector.broadcast %c0_i32 : i32 to vector<1x1xi32>
    %21 = arith.cmpi eq, %19, %20 : vector<1x1xi32>
    %22 = arith.extui %21 : vector<1x1xi1> to vector<1x1xi32>
    %23 = arith.sitofp %22 : vector<1x1xi32> to vector<1x1xf32>
    %c0_2 = arith.constant 0 : index
    %c0_3 = arith.constant 0 : index
    %24 = vector.load %arg2[%c0_2, %c0_3] : memref<256x64xf32, #tpu.memory_space<vmem>>, vector<256x64xf32>
    %cst = arith.constant dense<0.000000e+00> : vector<32x64xf32>
    %25 = tpu.matmul %0, %24, %cst {dimension_numbers = #tpu.dot_dimension_numbers<[1], [0], [0], [1], [0, 0, 1, 1], [], []>} : vector<32x256xf32>, vector<256x64xf32>, vector<32x64xf32> -> vector<32x64xf32>
    %c0_4 = arith.constant 0 : index
    %c0_5 = arith.constant 0 : index
    %26 = vector.load %arg3[%c0_4, %c0_5] : memref<256x64xf32, #tpu.memory_space<vmem>>, vector<256x64xf32>
    %cst_6 = arith.constant dense<0.000000e+00> : vector<32x64xf32>
    %27 = tpu.matmul %16, %26, %cst_6 {dimension_numbers = #tpu.dot_dimension_numbers<[1], [0], [0], [1], [0, 0, 1, 1], [], []>} : vector<32x256xf32>, vector<256x64xf32>, vector<32x64xf32> -> vector<32x64xf32>
    %c0_7 = arith.constant 0 : index
    %c0_8 = arith.constant 0 : index
    %28 = vector.load %arg4[%c0_7, %c0_8] : memref<256x64xf32, #tpu.memory_space<vmem>>, vector<256x64xf32>
    %cst_9 = arith.constant dense<0.000000e+00> : vector<32x64xf32>
    %29 = tpu.matmul %16, %28, %cst_9 {dimension_numbers = #tpu.dot_dimension_numbers<[1], [0], [0], [1], [0, 0, 1, 1], [], []>} : vector<32x256xf32>, vector<256x64xf32>, vector<32x64xf32> -> vector<32x64xf32>
    %30 = vector.broadcast %23 : vector<1x1xf32> to vector<32x64xf32>
    %31 = arith.mulf %30, %27 : vector<32x64xf32>
    %32 = arith.addf %25, %31 : vector<32x64xf32>
    %cst_10 = arith.constant 1.000000e+00 : f32
    %33 = vector.broadcast %cst_10 : f32 to vector<1x1xf32>
    %34 = arith.subf %33, %23 : vector<1x1xf32>
    %35 = vector.broadcast %34 : vector<1x1xf32> to vector<32x64xf32>
    %36 = arith.mulf %35, %29 : vector<32x64xf32>
    %37 = arith.addf %32, %36 : vector<32x64xf32>
    %c0_11 = arith.constant 0 : index
    %c0_12 = arith.constant 0 : index
    %38 = vector.load %arg5[%c0_11, %c0_12] : memref<256x64xf32, #tpu.memory_space<vmem>>, vector<256x64xf32>
    %cst_13 = arith.constant dense<0.000000e+00> : vector<32x64xf32>
    %39 = tpu.matmul %8, %38, %cst_13 {dimension_numbers = #tpu.dot_dimension_numbers<[1], [0], [0], [1], [0, 0, 1, 1], [], []>} : vector<32x256xf32>, vector<256x64xf32>, vector<32x64xf32> -> vector<32x64xf32>
    %40 = arith.addf %37, %39 : vector<32x64xf32>
    %c0_14 = arith.constant 0 : index
    %c0_15 = arith.constant 0 : index
    %41 = vector.load %arg6[%c0_14, %c0_15] : memref<16x256xf32, #tpu.memory_space<vmem>>, vector<16x256xf32>
    %c0_16 = arith.constant 0 : index
    %c0_17 = arith.constant 0 : index
    %42 = vector.load %arg7[%c0_16, %c0_17] : memref<16x256xf32, #tpu.memory_space<vmem>>, vector<16x256xf32>
    %c0_18 = arith.constant 0 : index
    %c0_19 = arith.constant 0 : index
    %43 = vector.load %arg8[%c0_18, %c0_19] : memref<8x32xf32, #tpu.memory_space<vmem>>, vector<8x32xf32>
    %c0_20 = arith.constant 0 : index
    %c0_21 = arith.constant 0 : index
    %44 = vector.load %arg9[%c0_20, %c0_21] : memref<8x1xf32, #tpu.memory_space<vmem>>, vector<8x1xf32>
    %c0_22 = arith.constant 0 : index
    %c0_23 = arith.constant 0 : index
    %45 = vector.load %arg10[%c0_22, %c0_23] : memref<32x8xf32, #tpu.memory_space<vmem>>, vector<32x8xf32>
    %c0_24 = arith.constant 0 : index
    %c0_25 = arith.constant 0 : index
    %46 = vector.load %arg11[%c0_24, %c0_25] : memref<32x1xf32, #tpu.memory_space<vmem>>, vector<32x1xf32>
    %cst_26 = arith.constant dense<0.000000e+00> : vector<8x64xf32>
    %47 = tpu.matmul %43, %40, %cst_26 {dimension_numbers = #tpu.dot_dimension_numbers<[1], [0], [0], [1], [0, 0, 1, 1], [], []>} : vector<8x32xf32>, vector<32x64xf32>, vector<8x64xf32> -> vector<8x64xf32>
    %48 = vector.broadcast %44 : vector<8x1xf32> to vector<8x64xf32>
    %49 = arith.addf %47, %48 : vector<8x64xf32>
    %cst_27 = arith.constant 0.000000e+00 : f32
    %50 = vector.broadcast %cst_27 : f32 to vector<8x64xf32>
    %51 = arith.maximumf %49, %50 : vector<8x64xf32>
    %cst_28 = arith.constant dense<0.000000e+00> : vector<32x64xf32>
    %52 = tpu.matmul %45, %51, %cst_28 {dimension_numbers = #tpu.dot_dimension_numbers<[1], [0], [0], [1], [0, 0, 1, 1], [], []>} : vector<32x8xf32>, vector<8x64xf32>, vector<32x64xf32> -> vector<32x64xf32>
    %53 = vector.broadcast %46 : vector<32x1xf32> to vector<32x64xf32>
    %54 = arith.addf %52, %53 : vector<32x64xf32>
    %55 = vector.extract_strided_slice %54 {offsets = [0, 0], sizes = [32, 16], strides = [1, 1]} : vector<32x64xf32> to vector<32x16xf32>
    %56 = vector.extract_strided_slice %54 {offsets = [0, 16], sizes = [32, 16], strides = [1, 1]} : vector<32x64xf32> to vector<32x16xf32>
    %57 = arith.addf %55, %56 : vector<32x16xf32>
    %58 = arith.negf %57 : vector<32x16xf32>
    %59 = math.exp %58 : vector<32x16xf32>
    %cst_29 = arith.constant 1.000000e+00 : f32
    %60 = vector.broadcast %cst_29 : f32 to vector<32x16xf32>
    %61 = arith.addf %60, %59 : vector<32x16xf32>
    %62 = arith.divf %60, %61 : vector<32x16xf32>
    %63 = vector.extract_strided_slice %54 {offsets = [0, 32], sizes = [32, 16], strides = [1, 1]} : vector<32x64xf32> to vector<32x16xf32>
    %64 = vector.extract_strided_slice %54 {offsets = [0, 48], sizes = [32, 16], strides = [1, 1]} : vector<32x64xf32> to vector<32x16xf32>
    %65 = arith.addf %63, %64 : vector<32x16xf32>
    %66 = arith.negf %65 : vector<32x16xf32>
    %67 = math.exp %66 : vector<32x16xf32>
    %cst_30 = arith.constant 1.000000e+00 : f32
    %68 = vector.broadcast %cst_30 : f32 to vector<32x16xf32>
    %69 = arith.addf %68, %67 : vector<32x16xf32>
    %70 = arith.divf %68, %69 : vector<32x16xf32>
    %cst_31 = arith.constant dense<0.000000e+00> : vector<32x256xf32>
    %71 = tpu.matmul %62, %41, %cst_31 {dimension_numbers = #tpu.dot_dimension_numbers<[1], [0], [0], [1], [0, 0, 1, 1], [], []>} : vector<32x16xf32>, vector<16x256xf32>, vector<32x256xf32> -> vector<32x256xf32>
    %cst_32 = arith.constant dense<0.000000e+00> : vector<32x256xf32>
    %72 = tpu.matmul %70, %42, %cst_32 {dimension_numbers = #tpu.dot_dimension_numbers<[1], [0], [0], [1], [0, 0, 1, 1], [], []>} : vector<32x16xf32>, vector<16x256xf32>, vector<32x256xf32> -> vector<32x256xf32>
    %73 = arith.mulf %0, %71 : vector<32x256xf32>
    %74 = arith.mulf %73, %72 : vector<32x256xf32>
    %c0_33 = arith.constant 0 : index
    %c0_34 = arith.constant 0 : index
    %75 = vector.load %arg12[%c0_33, %c0_34] : memref<32x256xf32, #tpu.memory_space<vmem>>, vector<32x256xf32>
    tpu.vector_store %arg12[%c0_33, %c0_34], %74 {strides = array<i32>} : memref<32x256xf32, #tpu.memory_space<vmem>>, vector<32x256xf32>,
    return
  }
  func.func @transform_0(%arg0: i32) -> (i32, i32) {
    %c0_i32 = arith.constant 0 : i32
    %c0_i32_0 = arith.constant 0 : i32
    return %arg0, %c0_i32 : i32, i32
  }
  func.func @transform_1(%arg0: i32) -> (i32, i32) {
    %c0_i32 = arith.constant 0 : i32
    %c0_i32_0 = arith.constant 0 : i32
    %c0_i32_1 = arith.constant 0 : i32
    return %c0_i32, %c0_i32_0 : i32, i32
  }
  func.func @transform_2(%arg0: i32) -> (i32, i32) {
    %c0_i32 = arith.constant 0 : i32
    %c0_i32_0 = arith.constant 0 : i32
    %c0_i32_1 = arith.constant 0 : i32
    return %c0_i32, %c0_i32_0 : i32, i32
  }
  func.func @transform_3(%arg0: i32) -> (i32, i32) {
    %c0_i32 = arith.constant 0 : i32
    %c0_i32_0 = arith.constant 0 : i32
    %c0_i32_1 = arith.constant 0 : i32
    return %c0_i32, %c0_i32_0 : i32, i32
  }
  func.func @transform_4(%arg0: i32) -> (i32, i32) {
    %c0_i32 = arith.constant 0 : i32
    %c0_i32_0 = arith.constant 0 : i32
    %c0_i32_1 = arith.constant 0 : i32
    return %c0_i32, %c0_i32_0 : i32, i32
  }
  func.func @transform_5(%arg0: i32) -> (i32, i32) {
    %c0_i32 = arith.constant 0 : i32
    %c0_i32_0 = arith.constant 0 : i32
    %c0_i32_1 = arith.constant 0 : i32
    return %c0_i32, %c0_i32_0 : i32, i32
  }
  func.func @transform_6(%arg0: i32) -> (i32, i32) {
    %c0_i32 = arith.constant 0 : i32
    %c0_i32_0 = arith.constant 0 : i32
    %c0_i32_1 = arith.constant 0 : i32
    return %c0_i32, %c0_i32_0 : i32, i32
  }
  func.func @transform_7(%arg0: i32) -> (i32, i32) {
    %c0_i32 = arith.constant 0 : i32
    %c0_i32_0 = arith.constant 0 : i32
    %c0_i32_1 = arith.constant 0 : i32
    return %c0_i32, %c0_i32_0 : i32, i32
  }
  func.func @transform_8(%arg0: i32) -> (i32, i32) {
    %c0_i32 = arith.constant 0 : i32
    %c0_i32_0 = arith.constant 0 : i32
    %c0_i32_1 = arith.constant 0 : i32
    return %c0_i32, %c0_i32_0 : i32, i32
  }
  func.func @transform_9(%arg0: i32) -> (i32, i32) {
    %c0_i32 = arith.constant 0 : i32
    %c0_i32_0 = arith.constant 0 : i32
    %c0_i32_1 = arith.constant 0 : i32
    return %c0_i32, %c0_i32_0 : i32, i32
  }
  func.func @transform_10(%arg0: i32) -> (i32, i32) {
    %c0_i32 = arith.constant 0 : i32
    %c0_i32_0 = arith.constant 0 : i32
    %c0_i32_1 = arith.constant 0 : i32
    return %c0_i32, %c0_i32_0 : i32, i32
  }
  func.func @transform_11(%arg0: i32) -> (i32, i32) {
    %c0_i32 = arith.constant 0 : i32
    %c0_i32_0 = arith.constant 0 : i32
    return %arg0, %c0_i32 : i32, i32
  }
}

</mosaic_0001>

<bundles_post_ra>
// kernel: tpu_custom_call.1
= control target key start
LH: loop header
LB: loop body
LE: loop exit
PB: predicated region body
PF: predicated region fallthrough
CT: control target
= control target key end

     0   :  { %s3383_s0 = inlined_call_operand.vmem [shape: f32[64,256], index: 0, kind: input, shape index: {}]   ;;  %s3384_s1 = inlined_call_operand.vmem [shape: f32[256,64], index: 1, kind: input, shape index: {}]   ;;  %s3385_s2 = inlined_call_operand.vmem [shape: f32[256,64], index: 2, kind: input, shape index: {}]   ;;  %s3386_s3 = inlined_call_operand.vmem [shape: f32[256,64], index: 3, kind: input, shape index: {}]   ;;  %s3387_s4 = inlined_call_operand.vmem [shape: f32[256,64], index: 4, kind: input, shape index: {}]   ;;  %s3388_s5 = inlined_call_operand.vmem [shape: f32[16,256], index: 5, kind: input, shape index: {}]   ;;  %s3389_s6 = inlined_call_operand.vmem [shape: f32[16,256], index: 6, kind: input, shape index: {}]   ;;  %s3390_s7 = inlined_call_operand.vmem [shape: f32[8,32], index: 7, kind: input, shape index: {}]   ;;  %s3391_s8 = inlined_call_operand.vmem [shape: f32[8,1], index: 8, kind: input, shape index: {}]   ;;  %s3392_s9 = inlined_call_operand.vmem [shape: f32[32,8], index: 9, kind: input, shape index: {}]   ;;  %s3393_s10 = inlined_call_operand.vmem [shape: f32[32,1], index: 10, kind: input, shape index: {}]   ;;  %s3394_s11 = inlined_call_operand.hbm [shape: f32[64,256], index: 11, kind: output, shape index: {}]  }
   0x1   :  { %3398 = sst [smem:[#allocation7_spill]] %s3383_s0 }
   0x2   :  { %16 = vsyncpa [#allocation3], 0 }
   0x3   :  { %18 = vsyncpa [#allocation3 + $0x1], 0  ;;  %s2452_s17 = smov 0   ;;  %s2454_s18 = smov 0  }
   0x4   :  { %s2456_s19 = smov 0   ;;  %s2458_s20 = smov 0  }
   0x5 LB: > { %3399 = sst [smem:[#allocation5_spill]] %s2370_s19  ;;  %s2473_s21 = sadd.s32 4294967295, %s2374_s20   ;;  %s2374_s20 = sphi %s2458_s20, %s3410_s20   ;;  %s2370_s19 = sphi %s2456_s19, %s3407_s19   ;;  %s2366_s18 = sphi %s2454_s18, %s3409_s18   ;;  %s2362_s17 = sphi %s2452_s17, %s3408_s17  }
   0x6   : > { %s1706_s22 = sadd.s32 4294967294, %s2374_s20   ;;  %s2477_s23 = sadd.s32 1, %s2374_s20  }
   0x7   : > { %s267_s24 = sadd.s32 1, %s2370_s19  ;;  %s264_s25 = ssub.s32 %s2374_s20, %s2477_s23 }
   0x8   : > { %p277_p0 = scmp.ne.s32.totalorder %s2370_s19, %s2366_s18  ;;  %p265_p1 = scmp.eq.s32.totalorder %s264_s25, 0 }
   0x9   : > { %p278_p2 = scmp.eq.s32.totalorder %s2473_s21, 1  ;;  %p283_p3 = scmp.ne.s32.totalorder %s2366_s18, %s2362_s17 }
   0xa   : > { %p284_p4 = scmp.eq.s32.totalorder %s1706_s22, 1  ;;  %p1709_p7 = scmp.ge.s32.totalorder %s2374_s20, 1 }
   0xb   : > { %s2488_s26 = scalar_select %p265_p1, %s2370_s19, %s267_s24  }
   0xc   : > { %p2490_p5 = por %p278_p2, %p277_p0  ;;  %p2494_p6 = por %p284_p4, %p283_p3 }
   0xd   : > { %3400 = sst [smem:[#allocation6_spill]] %s2488_s26  ;;  %p342_p8 = scmp.lt.s32.totalorder %s2374_s20, 3 }
   0xf   : > { %p343_p9 = pnand %p1709_p7, %p342_p8 }
  0x10   : > { %s1711_s29 = sshll.u32 (!%p343_p9), %s2473_s21, 2  ;;  %s3403_s0 = sld [smem:[#allocation7_spill]] (!%p343_p9)  ;;  %v415_v12 = vlaneseq (!%p343_p9)  ;;  %vm2386_vm8 = vmmov (!%p343_p9), 0   ;;  %vm1161_vm9 = vcmask (!%p343_p9), 261120   ;;  %vm1256_vm10 = vcmask (!%p343_p9), 64512  }
  0x11   : > { %346 = sbr.rel (%p343_p9) target bundleno = 1720 (0x6b8), region = 64  ;;  %p384_p10 = scmp.lt.s32.totalorder (!%p343_p9), %s1711_s29, 7  ;;  %vm1398_vm11 = vcmask (!%p343_p9), 130048  }
  0x12   : > { %s3396_s15 = smov (!%p343_p9), 1   ;;  %v2542_v13 = vand.u32 (!%p343_p9), 127, %v415_v12  ;;  %s2377_s16 = smov (!%p343_p9), 2  }
  0x13   : > { %s3395_s22 = smov (!%p343_p9), 16   ;;  %s2379_s24 = smov (!%p343_p9), 4  }
  0x14   : > { %vm520_vm0 = vcmp.lt.s32.totalorder (!%p343_p9), %v2542_v13, 1  ;;  %vm553_vm1 = vcmp.lt.s32.totalorder (!%p343_p9), %v2542_v13, 2  ;;  %vm417_vm2 = vcmp.lt.s32.totalorder (!%p343_p9), %v2542_v13, 16  ;;  %s2380_s25 = smov (!%p343_p9), 32   ;;  %vm586_vm3 = vcmp.lt.s32.totalorder (!%p343_p9), %v2542_v13, 4  ;;  %s2381_s26 = smov (!%p343_p9), 8  }
  0x15   : > { %vm450_vm4 = vcmp.lt.s32.totalorder (!%p343_p9), %v2542_v13, 32  ;;  %s2382_s19 = smov (!%p343_p9), 64   ;;  %s3404_s13 = smov (!%p343_p9), 1   ;;  %vm619_vm5 = vcmp.lt.s32.totalorder (!%p343_p9), %v2542_v13, 8  ;;  %vm483_vm6 = vcmp.lt.s32.totalorder (!%p343_p9), %v2542_v13, 64 }
  0x16   : > { %s380_s12 = sand.u32 (!%p343_p9), 1, %s2366_s18  }
  0x18   : > { %s3412_s29 = smov (!%p384_p10, %s1711_s29), 7 }
  0x19   : > { %s1738_s30 = sshll.u32 %s3412_s29, 4 }
  0x1a   : > { %s2504_s14 = scalar_lea.vmem %s3403_s0, %s1738_s30  ;;  %s2389_s30 = smov 96  }
  0x1b   : > { %v2507_v0 = vld [vmem:[%s2504_s14] sm:$0xff]  ;;  %v2510_v1 = vld [vmem:[%s2504_s14 + $0x8] sm:$0xff]  ;;  %v2521_v5 = vld [vmem:[%s2504_s14 + $0x10] sm:$0xff] }
  0x1c   : > { %v2513_v2 = vld [vmem:[%s2504_s14 + $0x20] sm:$0xff]  ;;  %v2146_v3 = vpack.i.bf16 %v2510_v1, %v2507_v0  ;;  %v2518_v4 = vld [vmem:[%s2504_s14 + $0x28] sm:$0xff]  ;;  %v2524_v6 = vld [vmem:[%s2504_s14 + $0x18] sm:$0xff] }
  0x1d   : > { %v2156_v7 = vpack.i.bf16 %v2518_v4, %v2513_v2  ;;  %v2529_v8 = vld [vmem:[%s2504_s14 + $0x30] sm:$0xff]  ;;  %v2532_v9 = vld [vmem:[%s2504_s14 + $0x38] sm:$0xff]  ;;  %v2151_v10 = vpack.i.bf16 %v2524_v6, %v2521_v5 }
  0x1e   : > { %2147 = vrot.lane.b32.xlu0 %v2146_v3, %s3396_s15  ;;  %v2161_v11 = vpack.i.bf16 %v2532_v9, %v2529_v8 }
  0x1f   : > { %2157 = vrot.lane.b32.xlu1 %v2156_v7, %s3396_s15 }
  0x22   : > { %2152 = vrot.lane.b32.xlu0 %v2151_v10, %s3396_s15 }
  0x23   : > { %2162 = vrot.lane.b32.xlu1 %v2161_v11, %s3396_s15  ;;  %s1710_s15 = sshll.u32 %s380_s12, 6 }
  0x90   : > { %v2148_v14 = vpop.permute.xlu0 %2147 }
  0x91   : > { %v2150_v15 = vunpack.i.h.bf16 %v2148_v14  ;;  %v2149_v16 = vunpack.i.l.bf16 %v2148_v14  ;;  %v2158_v17 = vpop.permute.xlu1 %2157 }
  0x92   : > { %v2160_v18 = vunpack.i.h.bf16 %v2158_v17  ;;  %v2159_v19 = vunpack.i.l.bf16 %v2158_v17 }
  0x93   : > { %v521_v20 = vsel %vm520_vm0, %v2149_v16, %v2150_v15  ;;  %v525_v21 = vsel %vm520_vm0, %v2150_v15, %v2149_v16 }
  0x94   : > { %v523_v22 = vsel %vm520_vm0, %v2159_v19, %v2160_v18  ;;  %v527_v23 = vsel %vm520_vm0, %v2160_v18, %v2159_v19  ;;  %v2153_v24 = vpop.permute.xlu0 %2152  ;;  %v529_v25 = vmax.f32 %v2507_v0, %v525_v21  ;;  %v530_v26 = vmax.f32 %v2510_v1, %v521_v20 }
  0x95   : > { %v2155_v27 = vunpack.i.h.bf16 %v2153_v24  ;;  %v2154_v28 = vunpack.i.l.bf16 %v2153_v24  ;;  %v2163_v29 = vpop.permute.xlu1 %2162  ;;  %v533_v30 = vmax.f32 %v2513_v2, %v527_v23  ;;  %v534_v31 = vmax.f32 %v2518_v4, %v523_v22 }
  0x96   : > { %v2165_v32 = vunpack.i.h.bf16 %v2163_v29  ;;  %v2164_v33 = vunpack.i.l.bf16 %v2163_v29  ;;  %v2166_v34 = vpack.i.bf16 %v530_v26, %v529_v25 }
  0x97   : > { %v522_v35 = vsel %vm520_vm0, %v2154_v28, %v2155_v27  ;;  %v526_v36 = vsel %vm520_vm0, %v2155_v27, %v2154_v28  ;;  %v2176_v37 = vpack.i.bf16 %v534_v31, %v533_v30 }
  0x98   : > { %v524_v38 = vsel %vm520_vm0, %v2164_v33, %v2165_v32  ;;  %v528_v39 = vsel %vm520_vm0, %v2165_v32, %v2164_v33  ;;  %2167 = vrot.lane.b32.xlu0 %v2166_v34, %s2377_s16  ;;  %v531_v40 = vmax.f32 %v2521_v5, %v526_v36  ;;  %v532_v41 = vmax.f32 %v2524_v6, %v522_v35 }
  0x99   : > { %v535_v42 = vmax.f32 %v2529_v8, %v528_v39  ;;  %v536_v43 = vmax.f32 %v2532_v9, %v524_v38 }
  0x9a   : > { %v2171_v44 = vpack.i.bf16 %v532_v41, %v531_v40 }
  0x9b   : > { %v2181_v45 = vpack.i.bf16 %v536_v43, %v535_v42 }
  0x9c   : > { %2172 = vrot.lane.b32.xlu1 %v2171_v44, %s2377_s16  ;;  %2177 = vrot.lane.b32.xlu0 %v2176_v37, %s2377_s16 }
  0xa0   : > { %2182 = vrot.lane.b32.xlu1 %v2181_v45, %s2377_s16  ;;  %2187 = vrot.lane.b32.xlu0 %v2146_v3, %s3395_s22  ;;  %s2390_s16 = smov [#allocation2]  }
  0xa4   : > { %2192 = vrot.lane.b32.xlu1 %v2151_v10, %s3395_s22  ;;  %2197 = vrot.lane.b32.xlu0 %v2156_v7, %s3395_s22 }
  0xa8   : > { %2202 = vrot.lane.b32.xlu1 %v2161_v11, %s3395_s22 }
 0x10a   : > { %v2168_v46 = vpop.permute.xlu0 %2167 }
 0x10b   : > { %v2170_v47 = vunpack.i.h.bf16 %v2168_v46  ;;  %v2169_v48 = vunpack.i.l.bf16 %v2168_v46 }
 0x10d   : > { %v554_v49 = vsel %vm553_vm1, %v2169_v48, %v2170_v47  ;;  %v558_v50 = vsel %vm553_vm1, %v2170_v47, %v2169_v48 }
 0x10e   : > { %v2173_v51 = vpop.permute.xlu1 %2172  ;;  %v2178_v52 = vpop.permute.xlu0 %2177  ;;  %v2578_v53 = vmax.f32 %v529_v25, %v558_v50  ;;  %v2580_v54 = vmax.f32 %v530_v26, %v554_v49  ;;  %v689_v49 = vld [vmem:[%s3385_s2 + $0x80] sm:$0xff]  ;;  %v690_v50 = vld [vmem:[%s3385_s2 + $0x88] sm:$0xff] }
 0x10f   : > { %v2175_v55 = vunpack.i.h.bf16 %v2173_v51  ;;  %v2174_v56 = vunpack.i.l.bf16 %v2173_v51  ;;  %v2180_v57 = vunpack.i.h.bf16 %v2178_v52  ;;  %v2179_v58 = vunpack.i.l.bf16 %v2178_v52  ;;  %v806_v51 = vld [vmem:[%s3386_s3 + $0x80] sm:$0xff] }
 0x110   : > { %v2206_v59 = vpack.i.bf16 %v2580_v54, %v2578_v53  ;;  %v1946_v52 = vpack.c.bf16 %v690_v50, %v689_v49  ;;  %v797_v49 = vld [vmem:[%s3386_s3 + $0x38] sm:$0xff]  ;;  %v697_v50 = vld [vmem:[%s3385_s2 + $0xc0] sm:$0xff] }
 0x111   : > { %v555_v60 = vsel %vm553_vm1, %v2174_v56, %v2175_v55  ;;  %v559_v61 = vsel %vm553_vm1, %v2175_v55, %v2174_v56  ;;  %v556_v62 = vsel %vm553_vm1, %v2179_v58, %v2180_v57  ;;  %v560_v63 = vsel %vm553_vm1, %v2180_v57, %v2179_v58  ;;  %v674_v55 = vld [vmem:[%s3385_s2 + $0x8] sm:$0xff] }
 0x112   : > { %v2183_v3 = vpop.permute.xlu1 %2182  ;;  %v2188_v7 = vpop.permute.xlu0 %2187  ;;  %2207 = vrot.lane.b32.xlu0 %v2206_v59, %s2379_s24  ;;  %v2594_v10 = vmax.f32 %v531_v40, %v559_v61  ;;  %v2596_v11 = vmax.f32 %v532_v41, %v555_v60  ;;  %v2598_v12 = vmax.f32 %v533_v30, %v560_v63  ;;  %v2600_v14 = vmax.f32 %v534_v31, %v556_v62  ;;  %v790_v59 = vld [vmem:[%s3386_s3] sm:$0xff]  ;;  %v791_v60 = vld [vmem:[%s3386_s3 + $0x8] sm:$0xff]  ;;  %v691_v61 = vld [vmem:[%s3385_s2 + $0x90] sm:$0xff] }
 0x113   : > { %v2185_v15 = vunpack.i.h.bf16 %v2183_v3  ;;  %v2184_v16 = vunpack.i.l.bf16 %v2183_v3  ;;  %v2190_v17 = vunpack.i.h.bf16 %v2188_v7  ;;  %v2189_v18 = vunpack.i.l.bf16 %v2188_v7  ;;  %1947 = vmatprep.subr.bf16.mxu0 %v1946_v52  ;;  %v692_v63 = vld [vmem:[%s3385_s2 + $0x98] sm:$0xff]  ;;  %v808_v3 = vld [vmem:[%s3386_s3 + $0x90] sm:$0xff]  ;;  %v814_v52 = vld [vmem:[%s3386_s3 + $0xc0] sm:$0xff] }
 0x114   : > { %v2211_v19 = vpack.i.bf16 %v2596_v11, %v2594_v10  ;;  %v2216_v20 = vpack.i.bf16 %v2600_v14, %v2598_v12  ;;  %v1980_v62 = vpack.c.bf16 %v791_v60, %v790_v59  ;;  %v809_v7 = vld [vmem:[%s3386_s3 + $0x98] sm:$0xff]  ;;  %v798_v60 = vld [vmem:[%s3386_s3 + $0x40] sm:$0xff] }
 0x115   : > { %v557_v21 = vsel %vm553_vm1, %v2184_v16, %v2185_v15  ;;  %v561_v22 = vsel %vm553_vm1, %v2185_v15, %v2184_v16  ;;  %v418_v23 = vsel %vm417_vm2, %v2189_v18, %v2190_v17  ;;  %v422_v24 = vsel %vm417_vm2, %v2190_v17, %v2189_v18  ;;  %v675_v17 = vld [vmem:[%s3385_s2 + $0x10] sm:$0xff]  ;;  %v676_v18 = vld [vmem:[%s3385_s2 + $0x18] sm:$0xff] }
 0x116   : > { %v2193_v25 = vpop.permute.xlu1 %2192  ;;  %2212 = vrot.lane.b32.xlu1 %v2211_v19, %s2379_s24  ;;  %v2198_v26 = vpop.permute.xlu0 %2197  ;;  %2217 = vrot.lane.b32.xlu0 %v2216_v20, %s2379_s24  ;;  %v2616_v27 = vmax.f32 %v535_v42, %v561_v22  ;;  %v2618_v28 = vmax.f32 %v536_v43, %v557_v21  ;;  %v2621_v29 = vmax.f32 %v2507_v0, %v422_v24  ;;  %v792_v19 = vld [vmem:[%s3386_s3 + $0x10] sm:$0xff]  ;;  %v793_v21 = vld [vmem:[%s3386_s3 + $0x18] sm:$0xff] }
 0x117   : > { %v2195_v30 = vunpack.i.h.bf16 %v2193_v25  ;;  %v2194_v31 = vunpack.i.l.bf16 %v2193_v25  ;;  %v2200_v32 = vunpack.i.h.bf16 %v2198_v26  ;;  %v2199_v33 = vunpack.i.l.bf16 %v2198_v26  ;;  %v693_v22 = vld [vmem:[%s3385_s2 + $0xa0] sm:$0xff] }
 0x118   : > { %v2221_v34 = vpack.i.bf16 %v2618_v28, %v2616_v27  ;;  %v2626_v35 = vmax.f32 %v2510_v1, %v418_v23  ;;  %v1950_v15 = vpack.c.bf16 %v692_v63, %v691_v61  ;;  %v1982_v16 = vpack.c.bf16 %v809_v7, %v808_v3  ;;  %v694_v23 = vld [vmem:[%s3385_s2 + $0xa8] sm:$0xff]  ;;  %v810_v26 = vld [vmem:[%s3386_s3 + $0xa0] sm:$0xff]  ;;  %v700_v63 = vld [vmem:[%s3385_s2 + $0xd8] sm:$0xff] }
 0x119   : > { %v419_v36 = vsel %vm417_vm2, %v2194_v31, %v2195_v30  ;;  %v423_v37 = vsel %vm417_vm2, %v2195_v30, %v2194_v31  ;;  %v420_v0 = vsel %vm417_vm2, %v2199_v33, %v2200_v32  ;;  %v424_v38 = vsel %vm417_vm2, %v2200_v32, %v2199_v33  ;;  %v811_v30 = vld [vmem:[%s3386_s3 + $0xa8] sm:$0xff]  ;;  %v677_v31 = vld [vmem:[%s3385_s2 + $0x20] sm:$0xff]  ;;  %v816_v3 = vld [vmem:[%s3386_s3 + $0xd0] sm:$0xff] }
 0x11a   : > { %v2203_v39 = vpop.permute.xlu1 %2202  ;;  %2222 = vrot.lane.b32.xlu1 %v2221_v34, %s2379_s24  ;;  %v2226_v40 = vpack.i.bf16 %v2626_v35, %v2621_v29  ;;  %v2640_v41 = vmax.f32 %v2521_v5, %v423_v37  ;;  %v2643_v42 = vmax.f32 %v2524_v6, %v419_v36  ;;  %v2646_v43 = vmax.f32 %v2513_v2, %v424_v38  ;;  %v678_v33 = vld [vmem:[%s3385_s2 + $0x28] sm:$0xff]  ;;  %v794_v34 = vld [vmem:[%s3386_s3 + $0x20] sm:$0xff]  ;;  %v695_v37 = vld [vmem:[%s3385_s2 + $0xb0] sm:$0xff]  ;;  %s2316_s24 = sshll.u32 %s2390_s16, 4  ;;  %s2317_s24 = int_to_ptr.vmem [resolvable:$false] %s2316_s24 }
 0x11b   : > { %v2205_v44 = vunpack.i.h.bf16 %v2203_v39  ;;  %v2204_v45 = vunpack.i.l.bf16 %v2203_v39  ;;  %v2649_v46 = vmax.f32 %v2518_v4, %v420_v0  ;;  %v1952_v20 = vpack.c.bf16 %v676_v18, %v675_v17  ;;  %v795_v36 = vld [vmem:[%s3386_s3 + $0x28] sm:$0xff]  ;;  %v696_v0 = vld [vmem:[%s3385_s2 + $0xb8] sm:$0xff]  ;;  %v812_v38 = vld [vmem:[%s3386_s3 + $0xb0] sm:$0xff]  ;;  %s2318_s29 = scalar_lea.vmem %s2317_s24, 2048 }
 0x11c   : > { %2227 = vrot.lane.b32.xlu0 %v2226_v40, %s2380_s25  ;;  %v2231_v47 = vpack.i.bf16 %v2643_v42, %v2640_v41  ;;  %v1984_v24 = vpack.c.bf16 %v793_v21, %v792_v19  ;;  %v1954_v25 = vpack.c.bf16 %v694_v23, %v693_v22  ;;  %v1986_v32 = vpack.c.bf16 %v811_v30, %v810_v26  ;;  %v799_v61 = vld [vmem:[%s3386_s3 + $0x48] sm:$0xff]  ;;  %v817_v7 = vld [vmem:[%s3386_s3 + $0xd8] sm:$0xff]  ;;  %v683_v17 = vld [vmem:[%s3385_s2 + $0x50] sm:$0xff] }
 0x11d   : > { %v421_v5 = vsel %vm417_vm2, %v2204_v45, %v2205_v44  ;;  %v425_v6 = vsel %vm417_vm2, %v2205_v44, %v2204_v45  ;;  %v2236_v2 = vpack.i.bf16 %v2649_v46, %v2646_v43  ;;  %v1956_v39 = vpack.c.bf16 %v678_v33, %v677_v31  ;;  %v813_v44 = vld [vmem:[%s3386_s3 + $0xb8] sm:$0xff]  ;;  %v679_v45 = vld [vmem:[%s3385_s2 + $0x30] sm:$0xff]  ;;  %v701_v23 = vld [vmem:[%s3385_s2 + $0xe0] sm:$0xff] }
 0x11e   : > { %2232 = vrot.lane.b32.xlu1 %v2231_v47, %s2380_s25  ;;  %v2660_v48 = vmax.f32 %v2529_v8, %v425_v6  ;;  %v2663_v4 = vmax.f32 %v2532_v9, %v421_v5  ;;  %v807_v8 = vld [vmem:[%s3386_s3 + $0x88] sm:$0xff]  ;;  %v673_v9 = vld [vmem:[%s3385_s2] sm:$0xff]  ;;  %v1988_v40 = vpack.c.bf16 %v795_v36, %v794_v34  ;;  %v680_v47 = vld [vmem:[%s3385_s2 + $0x38] sm:$0xff]  ;;  %v1958_v5 = vpack.c.bf16 %v696_v0, %v695_v37 }
 0x11f   : > { %v1978_v57 = vpack.c.bf16 %v807_v8, %v806_v51  ;;  %v1948_v58 = vpack.c.bf16 %v674_v55, %v673_v9  ;;  %v1990_v6 = vpack.c.bf16 %v813_v44, %v812_v38  ;;  %v698_v51 = vld [vmem:[%s3385_s2 + $0xc8] sm:$0xff]  ;;  %v1960_v9 = vpack.c.bf16 %v680_v47, %v679_v45  ;;  %v684_v18 = vld [vmem:[%s3385_s2 + $0x58] sm:$0xff]  ;;  %v800_v21 = vld [vmem:[%s3386_s3 + $0x50] sm:$0xff] }
 0x120   : > { %2237 = vrot.lane.b32.xlu0 %v2236_v2, %s2380_s25  ;;  %v2241_v56 = vpack.i.bf16 %v2663_v4, %v2660_v48  ;;  %v796_v2 = vld [vmem:[%s3386_s3 + $0x30] sm:$0xff]  ;;  %v815_v8 = vld [vmem:[%s3386_s3 + $0xc8] sm:$0xff]  ;;  %v801_v22 = vld [vmem:[%s3386_s3 + $0x58] sm:$0xff]  ;;  %v1968_v30 = vpack.c.bf16 %v684_v18, %v683_v17 }
 0x121   : > { %1979 = vmatprep.subr.bf16.mxu1 %v1978_v57  ;;  %1949 = vmatpush3.bf16.msra.mxu0 %v1948_v58  ;;  %v1992_v55 = vpack.c.bf16 %v797_v49, %v796_v2  ;;  %v682_v57 = vld [vmem:[%s3385_s2 + $0x48] sm:$0xff]  ;;  %v1962_v58 = vpack.c.bf16 %v698_v51, %v697_v50  ;;  %v1994_v59 = vpack.c.bf16 %v815_v8, %v814_v52  ;;  %v802_v37 = vld [vmem:[%s3386_s3 + $0x60] sm:$0xff]  ;;  %v704_v44 = vld [vmem:[%s3385_s2 + $0xf8] sm:$0xff] }
 0x122   : > { %2242 = vrot.lane.b32.xlu1 %v2241_v56, %s2380_s25  ;;  %1981 = vmatpush3.bf16.msra.mxu1 %v1980_v62  ;;  %v681_v56 = vld [vmem:[%s3385_s2 + $0x40] sm:$0xff]  ;;  %v699_v62 = vld [vmem:[%s3385_s2 + $0xd0] sm:$0xff]  ;;  %v819_v26 = vld [vmem:[%s3386_s3 + $0xe8] sm:$0xff]  ;;  %v2000_v31 = vpack.c.bf16 %v801_v22, %v800_v21  ;;  %s2384_s25 = smov 127  }
 0x123   : > { %1951 = vmatprep.subr.bf16.mxu0 %v1950_v15  ;;  %1983 = vmatprep.subr.bf16.mxu1 %v1982_v16  ;;  %v1964_v15 = vpack.c.bf16 %v682_v57, %v681_v56  ;;  %v1996_v16 = vpack.c.bf16 %v799_v61, %v798_v60  ;;  %v1966_v19 = vpack.c.bf16 %v700_v63, %v699_v62  ;;  %v686_v36 = vld [vmem:[%s3385_s2 + $0x68] sm:$0xff]  ;;  %v820_v45 = vld [vmem:[%s3386_s3 + $0xf0] sm:$0xff]  ;;  %v688_v2 = vld [vmem:[%s3385_s2 + $0x78] sm:$0xff] }
 0x124   : > { %v803_v0 = vld [vmem:[%s3386_s3 + $0x68] sm:$0xff]  ;;  %v804_v51 = vld [vmem:[%s3386_s3 + $0x70] sm:$0xff]  ;;  %v805_v52 = vld [vmem:[%s3386_s3 + $0x78] sm:$0xff] }
 0x125   : > { %1953 = vmatpush3.bf16.msra.mxu0 %v1952_v20  ;;  %v1998_v20 = vpack.c.bf16 %v817_v7, %v816_v3  ;;  %v2008_v8 = vpack.c.bf16 %v805_v52, %v804_v51  ;;  %v1033_v56 = vld [vmem:[%s3387_s4 + $0x80] sm:$0xff] }
 0x126   : > { %1985 = vmatpush3.bf16.msra.mxu1 %v1984_v24  ;;  %1955 = vmatprep.subr.bf16.mxu0 %v1954_v25  ;;  %v702_v24 = vld [vmem:[%s3385_s2 + $0xe8] sm:$0xff]  ;;  %v818_v25 = vld [vmem:[%s3386_s3 + $0xe0] sm:$0xff] }
 0x127   : > { %1987 = vmatprep.subr.bf16.mxu1 %v1986_v32  ;;  %v685_v32 = vld [vmem:[%s3385_s2 + $0x60] sm:$0xff]  ;;  %v1970_v33 = vpack.c.bf16 %v702_v24, %v701_v23  ;;  %v2002_v34 = vpack.c.bf16 %v819_v26, %v818_v25 }
 0x128   : > { %v1972_v38 = vpack.c.bf16 %v686_v36, %v685_v32 }
 0x129   : > { %1957 = vmatpush3.bf16.msra.mxu0 %v1956_v39  ;;  %v2004_v39 = vpack.c.bf16 %v803_v0, %v802_v37 }
 0x12a   : > { %1989 = vmatpush3.bf16.msra.mxu1 %v1988_v40  ;;  %1959 = vmatprep.subr.bf16.mxu0 %v1958_v5  ;;  %v703_v40 = vld [vmem:[%s3385_s2 + $0xf0] sm:$0xff]  ;;  %v821_v5 = vld [vmem:[%s3386_s3 + $0xf8] sm:$0xff] }
 0x12b   : > { %1991 = vmatprep.subr.bf16.mxu1 %v1990_v6  ;;  %v1974_v47 = vpack.c.bf16 %v704_v44, %v703_v40  ;;  %v687_v6 = vld [vmem:[%s3385_s2 + $0x70] sm:$0xff]  ;;  %v2006_v49 = vpack.c.bf16 %v821_v5, %v820_v45 }
 0x12c   : > { %v1976_v50 = vpack.c.bf16 %v688_v2, %v687_v6 }
 0x12d   : > { %1961 = vmatpush3.bf16.msra.mxu0 %v1960_v9  ;;  %v657_v9 = vld [vmem:[%s3384_s1 + $0x80] sm:$0xff] }
 0x12e   : > { %1993 = vmatpush3.bf16.msra.mxu1 %v1992_v55  ;;  %1963 = vmatprep.subr.bf16.mxu0 %v1962_v58  ;;  %v658_v55 = vld [vmem:[%s3384_s1 + $0x88] sm:$0xff] }
 0x12f   : > { %1995 = vmatprep.subr.bf16.mxu1 %v1994_v59  ;;  %v2010_v58 = vpack.c.bf16 %v658_v55, %v657_v9  ;;  %v1034_v59 = vld [vmem:[%s3387_s4 + $0x88] sm:$0xff] }
 0x130   : > { %v2042_v62 = vpack.c.bf16 %v1034_v59, %v1033_v56 }
 0x131   : > { %1965 = vmatpush3.bf16.msra.mxu0 %v1964_v15 }
 0x132   : > { %1997 = vmatpush3.bf16.msra.mxu1 %v1996_v16  ;;  %1967 = vmatprep.subr.bf16.mxu0 %v1966_v19 }
 0x133   : > { %1999 = vmatprep.subr.bf16.mxu1 %v1998_v20 }
 0x135   : > { %1969 = vmatpush3.bf16.msra.mxu0 %v1968_v30 }
 0x136   : > { %2001 = vmatpush3.bf16.msra.mxu1 %v2000_v31  ;;  %1971 = vmatprep.subr.bf16.mxu0 %v1970_v33 }
 0x137   : > { %2003 = vmatprep.subr.bf16.mxu1 %v2002_v34 }
 0x139   : > { %1973 = vmatpush3.bf16.msra.mxu0 %v1972_v38 }
 0x13a   : > { %2005 = vmatpush3.bf16.msra.mxu1 %v2004_v39  ;;  %1975 = vmatprep.subr.bf16.mxu0 %v1974_v47 }
 0x13b   : > { %2007 = vmatprep.subr.bf16.mxu1 %v2006_v49 }
 0x13d   : > { %1977 = vmatpush3.bf16.msra.mxu0 %v1976_v50 }
 0x13e   : > { %2009 = vmatpush3.bf16.msra.mxu1 %v2008_v8  ;;  %2011 = vmatprep.subr.bf16.mxu0 %v2010_v58 }
 0x13f   : > { %2043 = vmatprep.subr.bf16.mxu1 %v2042_v62 }
 0x184   : > { %v2208_v57 = vpop.permute.xlu0 %2207 }
 0x185   : > { %v2210_v60 = vunpack.i.h.bf16 %v2208_v57  ;;  %v2209_v61 = vunpack.i.l.bf16 %v2208_v57 }
 0x187   : > { %v587_v63 = vsel %vm586_vm3, %v2209_v61, %v2210_v60  ;;  %v591_v3 = vsel %vm586_vm3, %v2210_v60, %v2209_v61 }
 0x188   : > { %v2213_v7 = vpop.permute.xlu1 %2212  ;;  %v2218_v15 = vpop.permute.xlu0 %2217  ;;  %v2877_v16 = vmax.f32 %v2578_v53, %v591_v3  ;;  %v2880_v17 = vmax.f32 %v2580_v54, %v587_v63 }
 0x189   : > { %v2215_v18 = vunpack.i.h.bf16 %v2213_v7  ;;  %v2214_v19 = vunpack.i.l.bf16 %v2213_v7  ;;  %v2220_v20 = vunpack.i.h.bf16 %v2218_v15  ;;  %v2219_v21 = vunpack.i.l.bf16 %v2218_v15  ;;  %v1018_v15 = vld [vmem:[%s3387_s4 + $0x8] sm:$0xff] }
 0x18a   : > { %v2246_v22 = vpack.i.bf16 %v2880_v17, %v2877_v16 }
 0x18b   : > { %v588_v23 = vsel %vm586_vm3, %v2214_v19, %v2215_v18  ;;  %v592_v24 = vsel %vm586_vm3, %v2215_v18, %v2214_v19  ;;  %v589_v53 = vsel %vm586_vm3, %v2219_v21, %v2220_v20  ;;  %v593_v54 = vsel %vm586_vm3, %v2220_v20, %v2219_v21  ;;  %v659_v18 = vld [vmem:[%s3384_s1 + $0x90] sm:$0xff]  ;;  %v660_v21 = vld [vmem:[%s3384_s1 + $0x98] sm:$0xff] }
 0x18c   : > { %v2223_v25 = vpop.permute.xlu1 %2222  ;;  %2247 = vrot.lane.b32.xlu0 %v2246_v22, %s2381_s26  ;;  %v2894_v26 = vmax.f32 %v2594_v10, %v592_v24  ;;  %v2897_v30 = vmax.f32 %v2596_v11, %v588_v23  ;;  %v2900_v31 = vmax.f32 %v2598_v12, %v593_v54  ;;  %v2903_v32 = vmax.f32 %v2600_v14, %v589_v53  ;;  %v1035_v22 = vld [vmem:[%s3387_s4 + $0x90] sm:$0xff]  ;;  %v1036_v23 = vld [vmem:[%s3387_s4 + $0x98] sm:$0xff] }
 0x18d   : > { %v2225_v33 = vunpack.i.h.bf16 %v2223_v25  ;;  %v2224_v34 = vunpack.i.l.bf16 %v2223_v25 }
 0x18e   : > { %v2228_v36 = vpop.permute.xlu0 %2227  ;;  %v2251_v37 = vpack.i.bf16 %v2897_v30, %v2894_v26  ;;  %v2256_v10 = vpack.i.bf16 %v2903_v32, %v2900_v31 }
 0x18f   : > { %v590_v11 = vsel %vm586_vm3, %v2224_v34, %v2225_v33  ;;  %v594_v12 = vsel %vm586_vm3, %v2225_v33, %v2224_v34  ;;  %v2230_v0 = vunpack.i.h.bf16 %v2228_v36  ;;  %v2229_v14 = vunpack.i.l.bf16 %v2228_v36  ;;  %v643_v33 = vld [vmem:[%s3384_s1 + $0x10] sm:$0xff]  ;;  %v644_v34 = vld [vmem:[%s3384_s1 + $0x18] sm:$0xff] }
 0x190   : > { %v2233_v38 = vpop.permute.xlu1 %2232  ;;  %2252 = vrot.lane.b32.xlu1 %v2251_v37, %s2381_s26  ;;  %2257 = vrot.lane.b32.xlu0 %v2256_v10, %s2381_s26  ;;  %v2917_v39 = vmax.f32 %v2616_v27, %v594_v12  ;;  %v2920_v40 = vmax.f32 %v2618_v28, %v590_v11  ;;  %v2014_v12 = vpack.c.bf16 %v660_v21, %v659_v18  ;;  %v664_v18 = vld [vmem:[%s3384_s1 + $0xb8] sm:$0xff] }
 0x191   : > { %v451_v44 = vsel %vm450_vm4, %v2229_v14, %v2230_v0  ;;  %v455_v45 = vsel %vm450_vm4, %v2230_v0, %v2229_v14  ;;  %v2235_v47 = vunpack.i.h.bf16 %v2233_v38  ;;  %v2234_v5 = vunpack.i.l.bf16 %v2233_v38  ;;  %v1019_v14 = vld [vmem:[%s3387_s4 + $0x10] sm:$0xff]  ;;  %v1020_v38 = vld [vmem:[%s3387_s4 + $0x18] sm:$0xff] }
 0x192   : > { %v2238_v6 = vpop.permute.xlu0 %2237  ;;  %v2261_v2 = vpack.i.bf16 %v2920_v40, %v2917_v39  ;;  %v2929_v49 = vmax.f32 %v2621_v29, %v455_v45  ;;  %v2932_v27 = vmax.f32 %v2626_v35, %v451_v44  ;;  %v2046_v0 = vpack.c.bf16 %v1036_v23, %v1035_v22 }
 0x193   : > { %v452_v28 = vsel %vm450_vm4, %v2234_v5, %v2235_v47  ;;  %v456_v50 = vsel %vm450_vm4, %v2235_v47, %v2234_v5  ;;  %v2240_v51 = vunpack.i.h.bf16 %v2238_v6  ;;  %v2239_v52 = vunpack.i.l.bf16 %v2238_v6 }
 0x194   : > { %v2243_v8 = vpop.permute.xlu1 %2242  ;;  %2262 = vrot.lane.b32.xlu1 %v2261_v2, %s2381_s26  ;;  %v2266_v9 = vpack.i.bf16 %v2932_v27, %v2929_v49  ;;  %v2942_v29 = vmax.f32 %v2640_v41, %v456_v50  ;;  %v2945_v35 = vmax.f32 %v2643_v42, %v452_v28  ;;  %v2016_v6 = vpack.c.bf16 %v644_v34, %v643_v33  ;;  %v662_v50 = vld [vmem:[%s3384_s1 + $0xa8] sm:$0xff]  ;;  %v1023_v33 = vld [vmem:[%s3387_s4 + $0x30] sm:$0xff]  ;;  %v1024_v34 = vld [vmem:[%s3387_s4 + $0x38] sm:$0xff] }
 0x195   : > { %v453_v55 = vsel %vm450_vm4, %v2239_v52, %v2240_v51  ;;  %v457_v56 = vsel %vm450_vm4, %v2240_v51, %v2239_v52  ;;  %v2245_v57 = vunpack.i.h.bf16 %v2243_v8  ;;  %v2244_v58 = vunpack.i.l.bf16 %v2243_v8  ;;  %v1037_v51 = vld [vmem:[%s3387_s4 + $0xa0] sm:$0xff]  ;;  %v1038_v52 = vld [vmem:[%s3387_s4 + $0xa8] sm:$0xff] }
 0x196   : > { %2267 = vrot.lane.b32.xlu0 %v2266_v9, %s2382_s19  ;;  %v2271_v59 = vpack.i.bf16 %v2945_v35, %v2942_v29  ;;  %v2954_v60 = vmax.f32 %v2646_v43, %v457_v56  ;;  %v2957_v41 = vmax.f32 %v2649_v46, %v453_v55  ;;  %v641_v46 = vld [vmem:[%s3384_s1] sm:$0xff]  ;;  %v2048_v28 = vpack.c.bf16 %v1020_v38, %v1019_v14 }
 0x197   : > { %v454_v42 = vsel %vm450_vm4, %v2244_v58, %v2245_v57  ;;  %v458_v61 = vsel %vm450_vm4, %v2245_v57, %v2244_v58  ;;  %v645_v57 = vld [vmem:[%s3384_s1 + $0x20] sm:$0xff] }
 0x198   : > { %2272 = vrot.lane.b32.xlu1 %v2271_v59, %s2382_s19  ;;  %v2276_v62 = vpack.i.bf16 %v2957_v41, %v2954_v60  ;;  %v2966_v63 = vmax.f32 %v2660_v48, %v458_v61  ;;  %v2969_v3 = vmax.f32 %v2663_v4, %v454_v42  ;;  %v642_v48 = vld [vmem:[%s3384_s1 + $0x8] sm:$0xff]  ;;  %v1017_v4 = vld [vmem:[%s3387_s4] sm:$0xff] }
 0x199   : > { %v2012_v54 = vpack.c.bf16 %v642_v48, %v641_v46  ;;  %v2044_v25 = vpack.c.bf16 %v1018_v15, %v1017_v4  ;;  %v646_v42 = vld [vmem:[%s3384_s1 + $0x28] sm:$0xff]  ;;  %v663_v48 = vld [vmem:[%s3384_s1 + $0xb0] sm:$0xff] }
 0x19a   : > { %2277 = vrot.lane.b32.xlu0 %v2276_v62, %s2382_s19  ;;  %v2281_v43 = vpack.i.bf16 %v2969_v3, %v2966_v63  ;;  %v2020_v21 = vpack.c.bf16 %v646_v42, %v645_v57  ;;  %v652_v57 = vld [vmem:[%s3384_s1 + $0x58] sm:$0xff] }
 0x19c   : > { %2282 = vrot.lane.b32.xlu1 %v2281_v43, %s2382_s19  ;;  %v2050_v43 = vpack.c.bf16 %v1038_v52, %v1037_v51  ;;  %v1044_v51 = vld [vmem:[%s3387_s4 + $0xd8] sm:$0xff] }
 0x19e   : > { %636 = vrot.lane.b32.xlu0 %v2542_v13, %s3404_s13  ;;  %s2388_s13 = smov 112  }
 0x1fe   : > { %v2248_v7 = vpop.permute.xlu0 %2247 }
 0x1ff   : > { %v2250_v19 = vunpack.i.h.bf16 %v2248_v7  ;;  %v2249_v20 = vunpack.i.l.bf16 %v2248_v7 }
 0x201   : > { %v620_v24 = vsel %vm619_vm5, %v2249_v20, %v2250_v19  ;;  %v624_v53 = vsel %vm619_vm5, %v2250_v19, %v2249_v20  ;;  %v1039_v19 = vld [vmem:[%s3387_s4 + $0xb0] sm:$0xff]  ;;  %v1040_v20 = vld [vmem:[%s3387_s4 + $0xb8] sm:$0xff] }
 0x202   : > { %v2253_v36 = vpop.permute.xlu1 %2252  ;;  %v2258_v37 = vpop.permute.xlu0 %2257  ;;  %v629_v10 = vmax.f32 %v2880_v17, %v620_v24  ;;  %v628_v11 = vmax.f32 %v2877_v16, %v624_v53  ;;  %v661_v16 = vld [vmem:[%s3384_s1 + $0xa0] sm:$0xff] }
 0x203   : > { %v2255_v44 = vunpack.i.h.bf16 %v2253_v36  ;;  %v2254_v45 = vunpack.i.l.bf16 %v2253_v36  ;;  %v2260_v47 = vunpack.i.h.bf16 %v2258_v37  ;;  %v2259_v5 = vunpack.i.l.bf16 %v2258_v37 }
 0x204   : > { %769 = vmatprep.mubr.f32.mxu0 %v629_v10  ;;  %886 = vmatprep.mubr.f32.mxu1 %v629_v10  ;;  %v2018_v62 = vpack.c.bf16 %v662_v50, %v661_v16  ;;  %v2022_v37 = vpack.c.bf16 %v664_v18, %v663_v48  ;;  %v2054_v10 = vpack.c.bf16 %v1040_v20, %v1039_v19  ;;  %v1025_v16 = vld [vmem:[%s3387_s4 + $0x40] sm:$0xff]  ;;  %v1043_v50 = vld [vmem:[%s3387_s4 + $0xd0] sm:$0xff]  ;;  %v654_v20 = vld [vmem:[%s3384_s1 + $0x68] sm:$0xff] }
 0x205   : > { %770 = vmatmul.mubr.f32.vlgmr.msra.gmra.mrb[0].mxu0 %v628_v11  ;;  %887 = vmatmul.mubr.f32.vlgmr.msra.gmra.mrb[0].mxu1 %v628_v11  ;;  %v621_v17 = vsel %vm619_vm5, %v2254_v45, %v2255_v44  ;;  %v625_v2 = vsel %vm619_vm5, %v2255_v44, %v2254_v45  ;;  %v622_v56 = vsel %vm619_vm5, %v2259_v5, %v2260_v47  ;;  %v665_v11 = vld [vmem:[%s3384_s1 + $0xc0] sm:$0xff]  ;;  %v1042_v45 = vld [vmem:[%s3387_s4 + $0xc8] sm:$0xff] }
 0x206   : > { %2013 = vmatpush3.bf16.msra.mxu0 %v2012_v54  ;;  %2045 = vmatpush3.bf16.msra.mxu1 %v2044_v25  ;;  %v2263_v8 = vpop.permute.xlu1 %2262  ;;  %v631_v9 = vmax.f32 %v2897_v30, %v621_v17  ;;  %v630_v55 = vmax.f32 %v2894_v26, %v625_v2  ;;  %v1021_v30 = vld [vmem:[%s3387_s4 + $0x20] sm:$0xff]  ;;  %v1022_v26 = vld [vmem:[%s3387_s4 + $0x28] sm:$0xff]  ;;  %v626_v46 = vsel %vm619_vm5, %v2260_v47, %v2259_v5  ;;  %v648_v25 = vld [vmem:[%s3384_s1 + $0x38] sm:$0xff] }
 0x207   : > { %v2265_v58 = vunpack.i.h.bf16 %v2263_v8  ;;  %v2264_v59 = vunpack.i.l.bf16 %v2263_v8  ;;  %2015 = vmatprep.subr.bf16.mxu0 %v2014_v12  ;;  %2047 = vmatprep.subr.bf16.mxu1 %v2046_v0  ;;  %v633_v15 = vmax.f32 %v2903_v32, %v622_v56  ;;  %v2052_v22 = vpack.c.bf16 %v1022_v26, %v1021_v30  ;;  %v647_v32 = vld [vmem:[%s3384_s1 + $0x30] sm:$0xff]  ;;  %v666_v12 = vld [vmem:[%s3384_s1 + $0xc8] sm:$0xff]  ;;  %v1041_v44 = vld [vmem:[%s3387_s4 + $0xc0] sm:$0xff] }
 0x208   : > { %v2268_v61 = vpop.permute.xlu0 %2267  ;;  %774 = vmatprep.mubr.f32.mxu0 %v631_v9  ;;  %891 = vmatprep.mubr.f32.mxu1 %v631_v9  ;;  %v632_v54 = vmax.f32 %v2900_v31, %v626_v46  ;;  %v2024_v47 = vpack.c.bf16 %v648_v25, %v647_v32  ;;  %v2056_v5 = vpack.c.bf16 %v1024_v34, %v1023_v33  ;;  %v1026_v17 = vld [vmem:[%s3387_s4 + $0x48] sm:$0xff]  ;;  %v667_v2 = vld [vmem:[%s3384_s1 + $0xd0] sm:$0xff]  ;;  %v1045_v48 = vld [vmem:[%s3387_s4 + $0xe0] sm:$0xff] }
 0x209   : > { %v2270_v7 = vunpack.i.h.bf16 %v2268_v61  ;;  %v2269_v4 = vunpack.i.l.bf16 %v2268_v61  ;;  %775 = vmatmul.mubr.f32.gmra.mrb[2].mxu0 %v630_v55  ;;  %892 = vmatmul.mubr.f32.gmra.mrb[2].mxu1 %v630_v55  ;;  %v623_v23 = vsel %vm619_vm5, %v2264_v59, %v2265_v58  ;;  %v627_v31 = vsel %vm619_vm5, %v2265_v58, %v2264_v59  ;;  %v651_v56 = vld [vmem:[%s3384_s1 + $0x50] sm:$0xff]  ;;  %v1028_v61 = vld [vmem:[%s3387_s4 + $0x58] sm:$0xff]  ;;  %v670_v46 = vld [vmem:[%s3384_s1 + $0xe8] sm:$0xff] }
 0x20a   : > { %2017 = vmatpush3.bf16.msra.mxu0 %v2016_v6  ;;  %2049 = vmatpush3.bf16.msra.mxu1 %v2048_v28  ;;  %v635_v0 = vmax.f32 %v2920_v40, %v623_v23  ;;  %v649_v40 = vld [vmem:[%s3384_s1 + $0x40] sm:$0xff]  ;;  %v2026_v6 = vpack.c.bf16 %v666_v12, %v665_v11  ;;  %v2058_v28 = vpack.c.bf16 %v1042_v45, %v1041_v44  ;;  %v2383_v58 = vmov 0.0   ;;  %v1027_v26 = vld [vmem:[%s3387_s4 + $0x50] sm:$0xff]  ;;  %v1030_v23 = vld [vmem:[%s3387_s4 + $0x68] sm:$0xff] }
 0x20b   : > { %v484_v24 = vsel %vm483_vm6, %v2269_v4, %v2270_v7  ;;  %v488_v53 = vsel %vm483_vm6, %v2270_v7, %v2269_v4  ;;  %779 = vmatprep.mubr.f32.mxu0 %v633_v15  ;;  %896 = vmatprep.mubr.f32.mxu1 %v633_v15  ;;  %v2060_v55 = vpack.c.bf16 %v1026_v17, %v1025_v16  ;;  %v1046_v7 = vld [vmem:[%s3387_s4 + $0xe8] sm:$0xff]  ;;  %v2273_v4 = vpop.permute.xlu1 %2272  ;;  %v653_v19 = vld [vmem:[%s3384_s1 + $0x60] sm:$0xff]  ;;  %v671_v32 = vld [vmem:[%s3384_s1 + $0xf0] sm:$0xff] }
 0x20c   : > { %v3085_v36 = vpop.permute.xlu0 %2277  ;;  %2019 = vmatprep.subr.bf16.mxu0 %v2018_v62  ;;  %2051 = vmatprep.subr.bf16.mxu1 %v2050_v43  ;;  %v492_v14 = vmax.f32 %v2929_v49, %v488_v53  ;;  %v493_v38 = vmax.f32 %v2932_v27, %v484_v24  ;;  %v650_v49 = vld [vmem:[%s3384_s1 + $0x48] sm:$0xff]  ;;  %v634_v27 = vmax.f32 %v2917_v39, %v627_v31  ;;  %v668_v39 = vld [vmem:[%s3384_s1 + $0xd8] sm:$0xff]  ;;  %v669_v62 = vld [vmem:[%s3384_s1 + $0xe0] sm:$0xff]  ;;  %v2275_v25 = vunpack.i.h.bf16 %v2273_v4 }
 0x20d   : > { %780 = vmatmul.mubr.f32.gmra.mrb[4].mxu0 %v632_v54  ;;  %897 = vmatmul.mubr.f32.gmra.mrb[4].mxu1 %v632_v54  ;;  %v2028_v9 = vpack.c.bf16 %v650_v49, %v649_v40  ;;  %v2030_v42 = vpack.c.bf16 %v668_v39, %v667_v2  ;;  %v2062_v30 = vpack.c.bf16 %v1044_v51, %v1043_v50  ;;  %v672_v24 = vld [vmem:[%s3384_s1 + $0xf8] sm:$0xff]  ;;  %v1047_v53 = vld [vmem:[%s3387_s4 + $0xf0] sm:$0xff]  ;;  %v2274_v33 = vunpack.i.l.bf16 %v2273_v4  ;;  %v3213_v51 = vld [vmem:[%s2504_s14] sm:$0xff] }
 0x20e   : > { %2021 = vmatpush3.bf16.msra.mxu0 %v2020_v21  ;;  %2053 = vmatpush3.bf16.msra.mxu1 %v2052_v22  ;;  %v3129_v8 = vmax.f32 %v492_v14, %v493_v38  ;;  %v2032_v15 = vpack.c.bf16 %v652_v57, %v651_v56  ;;  %v2064_v18 = vpack.c.bf16 %v1028_v61, %v1027_v26  ;;  %v1029_v22 = vld [vmem:[%s3387_s4 + $0x60] sm:$0xff]  ;;  %v1048_v54 = vld [vmem:[%s3387_s4 + $0xf8] sm:$0xff]  ;;  %v2280_v45 = vunpack.i.h.bf16 %v3085_v36  ;;  %v1153_v61 = vld [vmem:[%s3393_s10 + $0x8] sm:$0xff] }
 0x20f   : > { %784 = vmatprep.mubr.f32.mxu0 %v635_v0  ;;  %901 = vmatprep.mubr.f32.mxu1 %v635_v0  ;;  %v2034_v21 = vpack.c.bf16 %v670_v46, %v669_v62  ;;  %v2036_v34 = vpack.c.bf16 %v654_v20, %v653_v19  ;;  %v2038_v31 = vpack.c.bf16 %v672_v24, %v671_v32  ;;  %v656_v12 = vld [vmem:[%s3384_s1 + $0x78] sm:$0xff]  ;;  %v1031_v0 = vld [vmem:[%s3387_s4 + $0x70] sm:$0xff]  ;;  %v3232_v56 = vld [vmem:[%s2504_s14 + $0x20] sm:$0xff]  ;;  %v2387_v26 = vmov 0  }
 0x210   : > { %2023 = vmatprep.subr.bf16.mxu0 %v2022_v37  ;;  %2055 = vmatprep.subr.bf16.mxu1 %v2054_v10  ;;  %v637_v52 = vpop.permute.xlu0 %636  ;;  %v2068_v37 = vpack.c.bf16 %v1030_v23, %v1029_v22  ;;  %v655_v10 = vld [vmem:[%s3384_s1 + $0x70] sm:$0xff]  ;;  %v2070_v11 = vpack.c.bf16 %v1048_v54, %v1047_v53  ;;  %v1032_v14 = vld [vmem:[%s3387_s4 + $0x78] sm:$0xff]  ;;  %v485_v38 = vsel %vm483_vm6, %v2274_v33, %v2275_v25 }
 0x211   : > { %785 = vmatmul.mubr.f32.gmra.mrb[6].mxu0 %v634_v27  ;;  %902 = vmatmul.mubr.f32.gmra.mrb[6].mxu1 %v634_v27  ;;  %vm638_vm7 = vcmp.eq.s32.totalorder %v637_v52, 0  ;;  %v489_v44 = vsel %vm483_vm6, %v2275_v25, %v2274_v33  ;;  %v2040_v40 = vpack.c.bf16 %v656_v12, %v655_v10  ;;  %v2072_v49 = vpack.c.bf16 %v1032_v14, %v1031_v0  ;;  %v3218_v52 = vld [vmem:[%s2504_s14 + $0x18] sm:$0xff]  ;;  %v1154_v62 = vld [vmem:[%s3393_s10 + $0x10] sm:$0xff] }
 0x212   : > { %2025 = vmatpush3.bf16.msra.mxu0 %v2024_v47  ;;  %2057 = vmatpush3.bf16.msra.mxu1 %v2056_v5  ;;  %v1714_v59 = vsel %vm638_vm7, 1.0, %v2383_v58  ;;  %v2279_v47 = vunpack.i.l.bf16 %v3085_v36  ;;  %v2283_v5 = vpop.permute.xlu1 %2282  ;;  %v494_v27 = vmax.f32 %v2942_v29, %v489_v44 }
 0x213   : > { %1113 = vmatprep.mubr.f32.mxu1 %v3129_v8  ;;  %2027 = vmatprep.subr.bf16.mxu0 %v2026_v6  ;;  %v1002_v43 = vsub.f32 1.0, %v1714_v59  ;;  %v495_v6 = vmax.f32 %v2945_v35, %v485_v38  ;;  %v2285_v36 = vunpack.i.h.bf16 %v2283_v5  ;;  %v2284_v2 = vunpack.i.l.bf16 %v2283_v5 }
 0x214   : > { %2059 = vmatprep.subr.bf16.mxu1 %v2058_v28  ;;  %981 = vmatprep.mubr.f32.mxu0 %v2510_v1  ;;  %v2066_v1 = vpack.c.bf16 %v1046_v7, %v1045_v48  ;;  %v486_v16 = vsel %vm483_vm6, %v2279_v47, %v2280_v45  ;;  %v490_v17 = vsel %vm483_vm6, %v2280_v45, %v2279_v47 }
 0x215   : > { %908 = vrot.lane.b32.xlu1 %v1714_v59, %s2384_s25  ;;  %1004 = vrot.lane.b32.xlu0 %v1002_v43, %s2384_s25  ;;  %v501_v28 = vmax.f32 %v494_v27, %v495_v6  ;;  %v496_v39 = vmax.f32 %v2954_v60, %v490_v17  ;;  %v497_v50 = vmax.f32 %v2957_v41, %v486_v16 }
 0x216   : > { %2029 = vmatpush3.bf16.msra.mxu0 %v2028_v9  ;;  %2061 = vmatpush3.bf16.msra.mxu1 %v2060_v55  ;;  %v487_v29 = vsel %vm483_vm6, %v2284_v2, %v2285_v36  ;;  %v491_v35 = vsel %vm483_vm6, %v2285_v36, %v2284_v2  ;;  %v3224_v9 = vld [vmem:[%s2504_s14 + $0x10] sm:$0xff]  ;;  %v3228_v55 = vld [vmem:[%s2504_s14 + $0x28] sm:$0xff] }
 0x217   : > { %2031 = vmatprep.subr.bf16.mxu0 %v2030_v42  ;;  %2063 = vmatprep.subr.bf16.mxu1 %v2062_v30  ;;  %v502_v60 = vmax.f32 %v496_v39, %v497_v50  ;;  %v498_v41 = vmax.f32 %v2966_v63, %v491_v35  ;;  %v499_v13 = vmax.f32 %v2969_v3, %v487_v29  ;;  %v3236_v63 = vld [vmem:[%s2504_s14 + $0x38] sm:$0xff]  ;;  %v3240_v3 = vld [vmem:[%s2504_s14 + $0x30] sm:$0xff]  ;;  %v2385_v42 = vmov 0.0|0.0   ;;  %v1147_v30 = vld [vmem:[%s3391_s8] sm:$0xff] }
 0x218   : > { %2286 = vset.pattern.permute.xlu1 %v2387_v26  ;;  %2287 = vset.pattern.permute.xlu0 %v2387_v26 }
 0x219   : > { %1158 = vperm.xlu1 %2286, %v1147_v30  }
 0x21a   : > { %2033 = vmatpush3.bf16.msra.mxu0 %v2032_v15  ;;  %2065 = vmatpush3.bf16.msra.mxu1 %v2064_v18 }
 0x21b   : > { %2035 = vmatprep.subr.bf16.mxu0 %v2034_v21  ;;  %2067 = vmatprep.subr.bf16.mxu1 %v2066_v1 }
 0x21d   : > { %1243 = vperm.xlu1 %2286, %v1153_v61  }
 0x21e   : > { %2037 = vmatpush3.bf16.msra.mxu0 %v2036_v34  ;;  %2069 = vmatpush3.bf16.msra.mxu1 %v2068_v37 }
 0x21f   : > { %2039 = vmatprep.subr.bf16.mxu0 %v2038_v31  ;;  %2071 = vmatprep.subr.bf16.mxu1 %v2070_v11 }
 0x221   : > { %1248 = vperm.xlu1 %2286, %v1154_v62  }
 0x222   : > { %2041 = vmatpush3.bf16.msra.mxu0 %v2040_v40  ;;  %2073 = vmatpush3.bf16.msra.mxu1 %v2072_v49 }
 0x223   : > { %2074 = vmatprep.subr.bf16.mxu0 %v2385_v42 }
 0x225   : > { %982 = vmatmul.mubr.f32.vlgmr.msra.gmra.mrb[8].mxu0 %v3213_v51  ;;  %1114 = vmatmul.mubr.f32.vlgmr.msra.gmra.mrb[8].mxu1 %v3129_v8  ;;  %v503_v8 = vmax.f32 %v498_v41, %v499_v13 }
 0x226   : > { %1118 = vmatprep.mubr.f32.mxu1 %v501_v28  ;;  %986 = vmatprep.mubr.f32.mxu0 %v3218_v52 }
 0x229   : > { %987 = vmatmul.mubr.f32.gmra.mrb[10].mxu0 %v3224_v9  ;;  %1119 = vmatmul.mubr.f32.gmra.mrb[10].mxu1 %v501_v28 }
 0x22a   : > { %1123 = vmatprep.mubr.f32.mxu1 %v502_v60  ;;  %991 = vmatprep.mubr.f32.mxu0 %v3228_v55 }
 0x22d   : > { %992 = vmatmul.mubr.f32.gmra.mrb[12].mxu0 %v3232_v56  ;;  %1124 = vmatmul.mubr.f32.gmra.mrb[12].mxu1 %v502_v60 }
 0x22e   : > { %1128 = vmatprep.mubr.f32.mxu1 %v503_v8  ;;  %996 = vmatprep.mubr.f32.mxu0 %v3236_v63 }
 0x231   : > { %997 = vmatmul.mubr.f32.gmra.mrb[14].mxu0 %v3240_v3  ;;  %1129 = vmatmul.mubr.f32.gmra.mrb[14].mxu1 %v503_v8 }
 0x232   : > { %1935 = vmatprep.mubr.msk.f32.mxu0 %vm2386_vm8, %v2383_v58 }
 0x287   : > { %v909_v57 = vpop.permute.xlu1 %908  ;;  %v1005_v59 = vpop.permute.xlu0 %1004 }
 0x288   : > { %2088 = vpush %v909_v57 }
 0x289   : > { %2090 = vpush %v1005_v59 }
 0x2b9   : > { %s2089_s22 = spop %2088 }
 0x2ba   : > { %s2091_s0 = spop %2090  ;;  %v911_v12 = vstv %s2089_s22  ;;  %s382_s22 = scalar_lea.vmem [#allocation2], %s1710_s15 }
 0x2bb   : > { %v1007_v38 = vstv %s2091_s0  ;;  %s1644_s0 = sshll.u32 %s382_s22, 4  ;;  %s3337_s0 = int_to_ptr.vmem [resolvable:$true] %s1644_s0 }
 0x2bc   : > { %s2312_s25 = scalar_lea.vmem %s3337_s0, 1024  ;;  %p2319_p0 = scmp.lt.s32.totalorder %s3337_s0, %s2317_s24 }
 0x2bd   : > { %p2313_p11 = scmp.ne.s32.totalorder %s3337_s0, %s2312_s25  ;;  %p2320_p1 = scmp.lt.s32.totalorder %s2318_s29, %s2312_s25 }
 0x2bf   : > { %p2314_p12 = pnand %p2313_p11, %p2490_p5  ;;  %p2321_p2 = por %p2320_p1, %p2319_p0 }
 0x2c1   : > { %p2315_p13 = pneg %p2314_p12 }
 0x2c3   : > { %p2322_p3 = pnand %p2321_p2, %p2315_p13 }
 0x2d8   : > { %v1773_v43 = vpop.f32.mrb[0].mxu0  ;;  %v1817_v46 = vpop.f32.mrb[0].mxu1 }
 0x2d9   : > { %v1774_v48 = vpop.f32.mrb[1].mxu0  ;;  %v1818_v7 = vpop.f32.mrb[1].mxu1 }
 0x2da   : > { %v1775_v4 = vadd.f32 %v1774_v48, %v1773_v43  ;;  %v1819_v15 = vadd.f32 %v1818_v7, %v1817_v46 }
 0x2dc   : > { %v1776_v18 = vpop.f32.mrb[2].mxu0  ;;  %v1820_v19 = vpop.f32.mrb[2].mxu1  ;;  %v913_v47 = vmul.f32 %v1775_v4, %v911_v12  ;;  %v1009_v49 = vmul.f32 %v1819_v15, %v1007_v38 }
 0x2dd   : > { %v1777_v20 = vpop.f32.mrb[3].mxu0  ;;  %v1821_v21 = vpop.f32.mrb[3].mxu1 }
 0x2de   : > { %v1778_v1 = vadd.f32 %v1777_v20, %v1776_v18  ;;  %v1822_v22 = vadd.f32 %v1821_v21, %v1820_v19 }
 0x2e0   : > { %v1779_v23 = vpop.f32.mrb[4].mxu0  ;;  %v1823_v32 = vpop.f32.mrb[4].mxu1  ;;  %v914_v2 = vmul.f32 %v1778_v1, %v911_v12  ;;  %v1010_v29 = vmul.f32 %v1822_v22, %v1007_v38 }
 0x2e1   : > { %v1780_v24 = vpop.f32.mrb[5].mxu0  ;;  %v1824_v53 = vpop.f32.mrb[5].mxu1 }
 0x2e2   : > { %v1781_v54 = vadd.f32 %v1780_v24, %v1779_v23  ;;  %v1825_v25 = vadd.f32 %v1824_v53, %v1823_v32 }
 0x2e4   : > { %v1782_v33 = vpop.f32.mrb[6].mxu0  ;;  %v1826_v34 = vpop.f32.mrb[6].mxu1  ;;  %v915_v59 = vmul.f32 %v1781_v54, %v911_v12  ;;  %v1011_v62 = vmul.f32 %v1825_v25, %v1007_v38  ;;  %v1146_v25 = vld [vmem:[%s3390_s7] sm:$0xff] }
 0x2e5   : > { %v1783_v37 = vpop.f32.mrb[7].mxu0  ;;  %v1827_v10 = vpop.f32.mrb[7].mxu1 }
 0x2e6   : > { %v1784_v31 = vadd.f32 %v1783_v37, %v1782_v33  ;;  %v1828_v11 = vadd.f32 %v1827_v10, %v1826_v34  ;;  %v1148_v33 = vld [vmem:[%s3392_s9] sm:$0xff]  ;;  %v1155_v34 = vld [vmem:[%s3393_s10 + $0x18] sm:$0xff]  ;;  %v1159_v37 = vpop.permute.xlu1 %1158 }
 0x2e7   : > { %1940 = vmatprep.mubr.msk.f32.mxu1 %vm1256_vm10, %v1148_v33 }
 0x2e8   : > { %v916_v4 = vmul.f32 %v1784_v31, %v911_v12  ;;  %v1012_v22 = vmul.f32 %v1828_v11, %v1007_v38  ;;  %v1151_v38 = vld [vmem:[%s3392_s9 + $0x18] sm:$0xff] }
 0x2f8   : > { %v1861_v0 = vpop.f32.mrb[8].mxu0  ;;  %v1905_v14 = vpop.f32.mrb[8].mxu1 }
 0x2f9   : > { %v1862_v44 = vpop.f32.mrb[9].mxu0  ;;  %v1906_v45 = vpop.f32.mrb[9].mxu1 }
 0x2fa   : > { %v1863_v5 = vadd.f32 %v1862_v44, %v1861_v0  ;;  %v1907_v40 = vadd.f32 %v1906_v45, %v1905_v14  ;;  %v1149_v0 = vld [vmem:[%s3392_s9 + $0x8] sm:$0xff]  ;;  %v1150_v14 = vld [vmem:[%s3392_s9 + $0x10] sm:$0xff]  ;;  %v1244_v45 = vpop.permute.xlu1 %1243 }
 0x2fc   : > { %v984_v27 = vadd.f32 %v1863_v5, %v913_v47  ;;  %v1864_v6 = vpop.f32.mrb[10].mxu0  ;;  %v1908_v16 = vpop.f32.mrb[10].mxu1 }
 0x2fd   : > { %v1865_v17 = vpop.f32.mrb[11].mxu0  ;;  %v1909_v36 = vpop.f32.mrb[11].mxu1 }
 0x2fe   : > { %v1013_v28 = vadd.f32 %v1009_v49, %v984_v27  ;;  %v1866_v39 = vadd.f32 %v1865_v17, %v1864_v6  ;;  %v1910_v50 = vadd.f32 %v1909_v36, %v1908_v16  ;;  %v1249_v16 = vpop.permute.xlu1 %1248 }
 0x300   : > { %v1134_v35 = vadd.f32 %v1907_v40, %v1013_v28  ;;  %v989_v60 = vadd.f32 %v1866_v39, %v914_v2  ;;  %v1867_v41 = vpop.f32.mrb[12].mxu0  ;;  %v1911_v13 = vpop.f32.mrb[12].mxu1  ;;  %v1139_v28 = vld [vmem:[%s3388_s5 + $0x8] sm:$0xff]  ;;  %v1141_v39 = vld [vmem:[%s3388_s5 + $0x18] sm:$0xff] }
 0x301   : > { %v1868_v8 = vpop.f32.mrb[13].mxu0  ;;  %v1912_v57 = vpop.f32.mrb[13].mxu1 }
 0x302   : > { %v1014_v30 = vadd.f32 %v1010_v29, %v989_v60  ;;  %v1869_v26 = vadd.f32 %v1868_v8, %v1867_v41  ;;  %v1913_v61 = vadd.f32 %v1912_v57, %v1911_v13  ;;  %v2080_v29 = vpack.c.bf16 %v1141_v39, %v1139_v28  ;;  %v1143_v41 = vld [vmem:[%s3389_s6 + $0x8] sm:$0xff]  ;;  %v1145_v13 = vld [vmem:[%s3389_s6 + $0x18] sm:$0xff]  ;;  %v1142_v8 = vld [vmem:[%s3389_s6] sm:$0xff] }
 0x303   : > { %v2084_v57 = vpack.c.bf16 %v1145_v13, %v1143_v41 }
 0x304   : > { %v1135_v43 = vadd.f32 %v1910_v50, %v1014_v30  ;;  %v994_v46 = vadd.f32 %v1869_v26, %v915_v59  ;;  %v1870_v48 = vpop.f32.mrb[14].mxu0  ;;  %v1914_v7 = vpop.f32.mrb[14].mxu1  ;;  %v1138_v50 = vld [vmem:[%s3388_s5] sm:$0xff]  ;;  %v1144_v59 = vld [vmem:[%s3389_s6 + $0x10] sm:$0xff] }
 0x305   : > { %v1871_v15 = vpop.f32.mrb[15].mxu0  ;;  %v1915_v18 = vpop.f32.mrb[15].mxu1  ;;  %v2086_v30 = vpack.c.bf16 %v1144_v59, %v1142_v8 }
 0x306   : > { %v2075_v19 = vpack.c.bf16 %v1135_v43, %v1134_v35  ;;  %v1015_v20 = vadd.f32 %v1011_v62, %v994_v46  ;;  %v1872_v21 = vadd.f32 %v1871_v15, %v1870_v48  ;;  %v1916_v1 = vadd.f32 %v1915_v18, %v1914_v7  ;;  %v1140_v35 = vld [vmem:[%s3388_s5 + $0x10] sm:$0xff] }
 0x307   : > { %v2082_v60 = vpack.c.bf16 %v1140_v35, %v1138_v50 }
 0x308   : > { %v1136_v23 = vadd.f32 %v1913_v61, %v1015_v20  ;;  %v999_v32 = vadd.f32 %v1872_v21, %v916_v4  ;;  %2076 = vmatpush3.bf16.msra.mxu0 %v2075_v19 }
 0x309   : > { %2077 = vmatprep.subr.bf16.mxu0 %v2385_v42  ;;  %v1152_v42 = vld [vmem:[%s3393_s10] sm:$0xff] }
 0x30a   : > { %v1016_v24 = vadd.f32 %v1012_v22, %v999_v32  ;;  %1238 = vperm.xlu0 %2287, %v1152_v42  }
 0x30c   : > { %v1137_v53 = vadd.f32 %v1916_v1, %v1016_v24 }
 0x30e   : > { %v2078_v54 = vpack.c.bf16 %v1137_v53, %v1136_v23  ;;  %1253 = vperm.xlu0 %2287, %v1155_v34  }
 0x310   : > { %2079 = vmatpush3.bf16.msra.mxu0 %v2078_v54 }
 0x311   : > { %2081 = vmatprep.subr.bf16.mxu0 %v2080_v29 }
 0x313   : > { %1936 = vmatmul.mubr.msk.f32.vlgmr.msra.gmra.mrb[16].mxu0 %vm1161_vm9, %v1146_v25 }
 0x314   : > { %1475 = vmatprep.mubr.f32.mxu0 %v2383_v58  ;;  %2083 = vmatpush1.bf16.msra.mxu0 %v2082_v60 }
 0x389   : > { %v1239_v44 = vpop.permute.xlu0 %1238 }
 0x38d   : > { %v1254_v27 = vpop.permute.xlu0 %1253 }
 0x3e6   : > { %v1231_v10 = vpop.f32.mrb[16].mxu0 }
 0x3e7   : > { %v1232_v31 = vadd.f32 %v1231_v10, %v1159_v37  ;;  %v1937_v11 = vpop.f32.mrb[17].mxu0 }
 0x3e9   : > { %v1235_v12 = vmax.f32 %v1232_v31, 0.0 }
 0x3eb   : > { %1938 = vmatprep.subr.mxu1 %v1235_v12 }
 0x3ec   : > { %1939 = vmatpush3.msra.mxu1 %v1235_v12 }
 0x3ed   : > { %1941 = vmatmul.mubr.msk.f32.vlgmr.msra.gmra.mrb[16].mxu1 %vm1256_vm10, %v1149_v0  ;;  %2085 = vmatprep.subr.bf16.mxu1 %v2084_v57 }
 0x3ee   : > { %1943 = vmatprep.mubr.msk.f32.mxu1 %vm1256_vm10, %v1150_v14  ;;  %2087 = vmatpush1.bf16.msra.mxu1 %v2086_v30 }
 0x3f1   : > { %1944 = vmatmul.mubr.msk.f32.gmra.mrb[18].mxu1 %vm1256_vm10, %v1151_v38 }
 0x3f2   : > { %1580 = vmatprep.mubr.f32.mxu1 %v2383_v58 }
 0x4c0   : > { %v1942_v47 = vpop.f32.mrb[16].mxu1 }
 0x4c1   : > { %v1341_v5 = vadd.f32 %v1942_v47, %v1244_v45  ;;  %v1335_v40 = vpop.f32.mrb[17].mxu1 }
 0x4c2   : > { %v1336_v49 = vadd.f32 %v1335_v40, %v1239_v44 }
 0x4c3   : > { %1360 = vrot.lane.b32.xlu0 %v1341_v5, %s2388_s13 }
 0x4c4   : > { %v1945_v6 = vpop.f32.mrb[18].mxu1  ;;  %1358 = vrot.lane.b32.xlu1 %v1336_v49, %s2388_s13 }
 0x4c5   : > { %v1351_v17 = vadd.f32 %v1945_v6, %v1254_v27  ;;  %v1345_v36 = vpop.f32.mrb[19].mxu1 }
 0x4c6   : > { %v1346_v2 = vadd.f32 %v1345_v36, %v1249_v16 }
 0x4c7   : > { %1364 = vrot.lane.b32.xlu0 %v1351_v17, %s2388_s13 }
 0x4c8   : > { %1362 = vrot.lane.b32.xlu1 %v1346_v2, %s2388_s13 }
 0x535   : > { %v1361_v26 = vpop.permute.xlu0 %1360 }
 0x536   : > { %v1371_v61 = vadd.f32 %v1361_v26, %v1341_v5  ;;  %v1359_v62 = vpop.permute.xlu1 %1358 }
 0x537   : > { %v1370_v43 = vadd.f32 %v1359_v62, %v1336_v49  ;;  %v2311_v49 = vld [vmem:[%s2504_s14 + $0x8] sm:$0xff]  ;;  %s1740_s14 = sshll.u32 %s2473_s21, 10  ;;  %s3341_s21 = scalar_lea.sflag [#allocation3], %s380_s12 }
 0x538   : > { %v1721_v46 = vmul.f32 -1.442695, %v1371_v61  ;;  %s3335_s13 = scalar_lea.hbm %s3394_s11, %s1740_s14 }
 0x539   : > { %v1720_v48 = vmul.f32 -1.442695, %v1370_v43  ;;  %v1365_v7 = vpop.permute.xlu0 %1364 }
 0x53a   : > { %2288 = vpow2.f32 %v1721_v46  ;;  %v1373_v4 = vadd.f32 %v1365_v7, %v1351_v17  ;;  %v1363_v15 = vpop.permute.xlu1 %1362 }
 0x53b   : > { %2290 = vpow2.f32 %v1720_v48  ;;  %v1372_v18 = vadd.f32 %v1363_v15, %v1346_v2 }
 0x53c   : > { %v1723_v19 = vmul.f32 -1.442695, %v1373_v4 }
 0x53d   : > { %v1722_v20 = vmul.f32 -1.442695, %v1372_v18 }
 0x53e   : > { %2292 = vpow2.f32 %v1723_v19 }
 0x53f   : > { %2294 = vpow2.f32 %v1722_v20 }
 0x544   : > { %v2289_v21 = vpop.eup %2288 }
 0x545   : > { %v2291_v1 = vpop.eup %2290  ;;  %v1387_v22 = vadd.f32 1.0, %v2289_v21 }
 0x546   : > { %v1386_v23 = vadd.f32 1.0, %v2291_v1 }
 0x547   : > { %2296 = vrcp.f32 %v1387_v22 }
 0x548   : > { %v2293_v32 = vpop.eup %2292  ;;  %2298 = vrcp.f32 %v1386_v23 }
 0x549   : > { %v2295_v24 = vpop.eup %2294  ;;  %v1389_v53 = vadd.f32 1.0, %v2293_v32 }
 0x54a   : > { %v1388_v54 = vadd.f32 1.0, %v2295_v24 }
 0x54b   : > { %2300 = vrcp.f32 %v1389_v53 }
 0x54c   : > { %2302 = vrcp.f32 %v1388_v54 }
 0x551   : > { %v2297_v25 = vpop.eup %2296 }
 0x552   : > { %v2299_v33 = vpop.eup %2298  ;;  %1502 = vrot.lane.b32.xlu0 %v2297_v25, %s2389_s30 }
 0x553   : > { %1500 = vrot.lane.b32.xlu1 %v2299_v33, %s2389_s30  ;;  %1724 = vmatmul.mubr.msk.f32.vlgmr.msra.gmra.mrb[18].mxu0 %vm1398_vm11, %v2299_v33 }
 0x554   : > { %1481 = vmatprep.mubr.f32.mxu0 %v2383_v58 }
 0x555   : > { %v2301_v42 = vpop.eup %2300 }
 0x556   : > { %v2303_v34 = vpop.eup %2302  ;;  %1506 = vrot.lane.b32.xlu0 %v2301_v42, %s2389_s30 }
 0x557   : > { %1725 = vmatmul.mubr.msk.f32.gmra.mrb[20].mxu0 %vm1398_vm11, %v2297_v25  ;;  %1504 = vrot.lane.b32.xlu1 %v2303_v34, %s2389_s30 }
 0x558   : > { %1487 = vmatprep.mubr.f32.mxu0 %v2383_v58 }
 0x55b   : > { %1726 = vmatmul.mubr.msk.f32.gmra.mrb[22].mxu0 %vm1398_vm11, %v2303_v34 }
 0x55c   : > { %1493 = vmatprep.mubr.f32.mxu0 %v2383_v58 }
 0x55f   : > { %1727 = vmatmul.mubr.msk.f32.gmra.mrb[24].mxu0 %vm1398_vm11, %v2301_v42 }
 0x5c4   : > { %v1503_v10 = vpop.permute.xlu0 %1502 }
 0x5c5   : > { %v1501_v37 = vpop.permute.xlu1 %1500 }
 0x5c6   : > { %1728 = vmatmul.mubr.msk.f32.vlgmr.msra.gmra.mrb[20].mxu1 %vm1398_vm11, %v1501_v37 }
 0x5c7   : > { %1586 = vmatprep.mubr.f32.mxu1 %v2383_v58 }
 0x5c8   : > { %v1507_v11 = vpop.permute.xlu0 %1506 }
 0x5c9   : > { %v1505_v31 = vpop.permute.xlu1 %1504 }
 0x5ca   : > { %1729 = vmatmul.mubr.msk.f32.gmra.mrb[22].mxu1 %vm1398_vm11, %v1503_v10 }
 0x5cb   : > { %1592 = vmatprep.mubr.f32.mxu1 %v2383_v58 }
 0x5ce   : > { %1730 = vmatmul.mubr.msk.f32.gmra.mrb[24].mxu1 %vm1398_vm11, %v1505_v31 }
 0x5cf   : > { %1598 = vmatprep.mubr.f32.mxu1 %v2383_v58 }
 0x5d2   : > { %1731 = vmatmul.mubr.msk.f32.gmra.mrb[26].mxu1 %vm1398_vm11, %v1507_v11 }
 0x626   : > { %v1477_v12 = vpop.f32.mrb[18].mxu0 }
 0x627   : > { %v1479_v0 = vpop.f32.mrb[19].mxu0  ;;  %v1605_v40 = vmul.f32 %v3213_v51, %v1477_v12 }
 0x628   : > { %v1606_v27 = vmul.f32 %v2311_v49, %v1479_v0 }
 0x62a   : > { %v1483_v14 = vpop.f32.mrb[20].mxu0 }
 0x62b   : > { %v1485_v38 = vpop.f32.mrb[21].mxu0  ;;  %v1607_v36 = vmul.f32 %v3224_v9, %v1483_v14 }
 0x62c   : > { %v1608_v2 = vmul.f32 %v3218_v52, %v1485_v38 }
 0x62e   : > { %v1489_v44 = vpop.f32.mrb[22].mxu0 }
 0x62f   : > { %v1491_v45 = vpop.f32.mrb[23].mxu0  ;;  %v1609_v51 = vmul.f32 %v3232_v56, %v1489_v44 }
 0x630   : > { %v1610_v35 = vmul.f32 %v3228_v55, %v1491_v45 }
 0x632   : > { %v1495_v47 = vpop.f32.mrb[24].mxu0 }
 0x633   : > { %v1497_v5 = vpop.f32.mrb[25].mxu0  ;;  %v1611_v8 = vmul.f32 %v3240_v3, %v1495_v47 }
 0x634   : > { %v1612_v52 = vmul.f32 %v3236_v63, %v1497_v5 }
 0x699   : > { %v1582_v6 = vpop.f32.mrb[20].mxu1 }
 0x69a   : > { %v1613_v58 = vmul.f32 %v1605_v40, %v1582_v6  ;;  %v1584_v16 = vpop.f32.mrb[21].mxu1 }
 0x69b   : > { %v1614_v17 = vmul.f32 %v1606_v27, %v1584_v16 }
 0x69c   : > { %1621 = vst [vmem:[%s382_s22] sm:$0xff] %v1613_v58 }
 0x69d   : > { %1622 = vst [vmem:[%s382_s22 + $0x8] sm:$0xff] %v1614_v17  ;;  %v1588_v28 = vpop.f32.mrb[22].mxu1 }
 0x69e   : > { %v1615_v39 = vmul.f32 %v1607_v36, %v1588_v28  ;;  %v1590_v50 = vpop.f32.mrb[23].mxu1 }
 0x69f   : > { %v1616_v29 = vmul.f32 %v1608_v2, %v1590_v50 }
 0x6a0   : > { %1623 = vst [vmem:[%s382_s22 + $0x10] sm:$0xff] %v1615_v39 }
 0x6a1   : > { %1624 = vst [vmem:[%s382_s22 + $0x18] sm:$0xff] %v1616_v29  ;;  %v1594_v60 = vpop.f32.mrb[24].mxu1 }
 0x6a2   : > { %v1617_v41 = vmul.f32 %v1609_v51, %v1594_v60  ;;  %v1596_v13 = vpop.f32.mrb[25].mxu1 }
 0x6a3   : > { %v1618_v9 = vmul.f32 %v1610_v35, %v1596_v13 }
 0x6a4   : > { %1625 = vst [vmem:[%s382_s22 + $0x20] sm:$0xff] %v1617_v41 }
 0x6a5   : > { %1626 = vst [vmem:[%s382_s22 + $0x28] sm:$0xff] %v1618_v9  ;;  %v1600_v57 = vpop.f32.mrb[26].mxu1 }
 0x6a6   : > { %v1619_v56 = vmul.f32 %v1611_v8, %v1600_v57  ;;  %v1602_v59 = vpop.f32.mrb[27].mxu1 }
 0x6a7   : > { %v1620_v55 = vmul.f32 %v1612_v52, %v1602_v59 }
 0x6a8   : > { %1627 = vst [vmem:[%s382_s22 + $0x30] sm:$0xff] %v1619_v56 }
 0x6a9   : > { %1628 = vst [vmem:[%s382_s22 + $0x38] sm:$0xff] %v1620_v55 }
 0x6aa   : > { %2325 = shalt.err (!%p2322_p3)
}
 0x6ab   : > { %s2326_s30 = scalar_lea.hbm %s3335_s13, 1024  ;;  %s2330_s22 = scalar_lea.hbm %s3394_s11, 2048 }
 0x6ac   : > { %p2327_p4 = scmp.ne.s32.totalorder %s3335_s13, %s2326_s30  ;;  %p2331_p9 = scmp.lt.u32.totalorder %s3335_s13, %s3394_s11 }
 0x6ad   : > { %p2332_p10 = scmp.lt.u32.totalorder %s2330_s22, %s2326_s30  ;;  %p2334_p12 = scmp.lt.u32.totalorder %s2326_s30, %s3335_s13 }
 0x6ae   : > { %p2328_p7 = pnand %p2327_p4, %p2490_p5 }
 0x6af   : > { %p2333_p11 = por %p2332_p10, %p2331_p9 }
 0x6b0   : > { %p2329_p8 = pneg %p2328_p7 }
 0x6b1   : > { %p2335_p13 = por %p2334_p12, %p2333_p11 }
 0x6b3   : > { %p2336_p0 = pnand %p2335_p13, %p2329_p8 }
 0x6b5   : > { %2339 = shalt.err (!%p2336_p0)
}
 0x6b6   : > { %s2391_s19 = smov 256   ;;  %s3405_s25 = smov 16  }
 0x6b7   : > { %2092 = dma.vmem_to_hbm [thread:$0]  (%p2490_p5), %s3337_s0, 1024, %s3335_s13, %s3341_s21, %s2391_s19, %s2391_s19, %s3405_s25  }
 0x6b8 PF: > { %p2098_p1 = scmp.ge.s32.totalorder %s2374_s20, 2  ;;  %s1659_s16 = sand.u32 1, %s2362_s17  }
 0x6b9   : > { %s1660_s24 = scalar_lea.sflag [#allocation3], %s1659_s16 }
 0x6ba   : > { %p2095_p2 = pnand %p2098_p1, %p2494_p6 }
 0x6bc   : > { %2357 = dma.done.wait (!%p2095_p2), %s1660_s24, 1024  }
 0x6bd   : > { %2359 = vsyncadd (!%p2095_p2), %s1660_s24, 4294966272  ;;  %s3406_s29 = sld [smem:[#allocation5_spill]]  ;;  %s3407_s19 = sld [smem:[#allocation6_spill]] }
 0x6be   : > { %p21_p3 = scmp.ge.s32.totalorder %s2477_s23, 4   ;;  %s3408_s17 = smov %s2366_s18 }
 0x6bf   : > { %s3410_s20 = smov %s2477_s23 }
 0x6c0   :  { %23 = sbr.rel (!%p21_p3) target bundleno = 5 (0x5), region = 99 }
 0x6c3   : > { %s3409_s18 = smov %s3406_s29 }
 0x6c7   :  { %1665 = vsyncpa [#allocation3], 1 }
 0x6c8   :  { %1667 = vsyncpa [#allocation3 + $0x1], 1 }

</bundles_post_ra>
